<compile_context>
chip_gen: v7x
topology: tpu7x:2x2x1
jax: 0.10.0
libtpu: 0.0.40
codegen_flags: <defaults>
</compile_context>

<pallas_src>
import functools

import jax
import jax.numpy as jnp
from jax.experimental import pallas as pl
from jax.experimental.pallas import tpu as pltpu

NUM_BOND_TYPE = 4
LEAKY_SLOPE = 0.01  # nn.LeakyReLU default negative_slope


def _leaky_relu(v):
    return jnp.where(v > 0, v, LEAKY_SLOPE * v)


# --------------------------------------------------------------------------------------
# Fused per-layer kernel: EdgeUpdateNetwork + dense NodeUpdateNetwork (+ graph_emb).
# The output ref x_out_ref is the carried node-embedding state across grid steps.
# --------------------------------------------------------------------------------------
def fused_layer_kernel(x_in_ref, a_st_ref, w_st_ref, invdeg_ref, p_ref, q_ref, pt_ref,
                       w0_ref, w1_ref, w2_ref, wo_ref, bo_ref,
                       wn_ref, bn_ref, wr_ref, br_ref, emb_ref,
                       x_out_ref, gemb_ref, *, n_task, n_sup):
    layer = pl.program_id(0)

    @pl.when(layer == 0)
    def _():
        x_out_ref[...] = x_in_ref[...]          # initialize the resident state

    x = x_out_ref[...]                          # [M, d]
    n_sample = p_ref.shape[1]
    nn_pairs = p_ref.shape[0]

    # ---- EdgeUpdateNetwork.sim_network on the sample sub-graph ----------------------
    x_s = x[n_task:, :]                                                    # [N, d]
    xi = jnp.dot(p_ref[...], x_s, preferred_element_type=jnp.float32)     # x_s[p // N]
    xj = jnp.dot(q_ref[...], x_s, preferred_element_type=jnp.float32)     # x_s[p %  N]
    feat = jnp.exp(-jnp.abs(xi - xj))                                      # [N*N, d]
    h = _leaky_relu(jnp.dot(feat, w0_ref[0], preferred_element_type=jnp.float32))
    h = _leaky_relu(jnp.dot(h, w1_ref[0], preferred_element_type=jnp.float32))
    h = _leaky_relu(jnp.dot(h, w2_ref[0], preferred_element_type=jnp.float32))
    # conv_out has a single output channel -> VPU reduction, not an N=1 MXU matmul
    sim = jnp.sum(h * wo_ref[0], axis=-1, keepdims=True) + bo_ref[layer]   # [N*N, 1]
    pair_idx = jax.lax.broadcasted_iota(jnp.int32, (nn_pairs, 1), 0)
    off_diag = (pair_idx % (n_sample + 1) != 0).astype(jnp.float32)        # zero diagonal
    adj_flat = jax.nn.sigmoid(sim) * off_diag                              # flat adjacency

    # ---- NodeUpdateNetwork (dense mean-aggregation message passing) -----------------
    neigh = jnp.dot(x, wn_ref[0], preferred_element_type=jnp.float32) + bn_ref[0]
    root = jnp.dot(x, wr_ref[0], preferred_element_type=jnp.float32) + br_ref[0]
    emb = emb_ref[0]                                                       # [4, d]
    # static unit-weight task<->sample edges: neighbors + per-type edge embeddings
    msg = jnp.dot(a_st_ref[...], neigh, preferred_element_type=jnp.float32)
    msg = msg + jnp.dot(w_st_ref[...], emb, preferred_element_type=jnp.float32)
    # dynamic sample<->sample edges (type 0), weighted by the learned adjacency:
    #   sum_j adj[i,j] * (neigh_j + emb[0])  ==  PT @ (adj_flat * (Q @ neigh_s + emb[0]))
    neigh_j = jnp.dot(q_ref[...], neigh[n_task:, :], preferred_element_type=jnp.float32)
    msg = msg + jnp.dot(pt_ref[...], adj_flat * (neigh_j + emb[0:1, :]),
                        preferred_element_type=jnp.float32)
    msg = msg * invdeg_ref[...] + root
    x_new = _leaky_relu(msg)
    x_out_ref[...] = x_new

    # graph_emb = x[0] + sigmoid(mean(x[n_task:n_task+n_s])); only the last write survives
    gemb_ref[...] = x_new[0:1, :] + jax.nn.sigmoid(
        jnp.mean(x_new[n_task:n_task + n_sup, :], axis=0, keepdims=True))


def fused_context_layers(params, input_emb0, static_ops, num_layer, n_task, n_sup):
    m, d = input_emb0.shape
    a_static, w_static, inv_deg, p_mat, q_mat, pt_mat = static_ops
    nn_pairs, n_sample = p_mat.shape
    edge, node = params['edge'], params['node']

    full2 = lambda l: (0, 0)
    per_layer3 = lambda l: (l, 0, 0)

    def layer_spec(a):
        return pl.BlockSpec((1,) + a.shape[1:], per_layer3)

    kernel = functools.partial(fused_layer_kernel, n_task=n_task, n_sup=n_sup)
    return pl.pallas_call(
        kernel,
        out_shape=(jax.ShapeDtypeStruct((m, d), jnp.float32),
                   jax.ShapeDtypeStruct((1, d), jnp.float32)),
        grid=(num_layer,),
        in_specs=[
            pl.BlockSpec((m, d), full2),                   # initial input_emb
            pl.BlockSpec((m, m), full2),                   # static unit-weight adjacency
            pl.BlockSpec((m, NUM_BOND_TYPE), full2),       # static per-type weighted degree
            pl.BlockSpec((m, 1), full2),                   # 1 / mean-aggregation degree
            pl.BlockSpec((nn_pairs, n_sample), full2),     # P  (pair -> i gather)
            pl.BlockSpec((nn_pairs, n_sample), full2),     # Q  (pair -> j gather)
            pl.BlockSpec((m, nn_pairs), full2),            # PT (pair -> node scatter-sum)
            layer_spec(edge['w0']), layer_spec(edge['w1']), layer_spec(edge['w2']),
            layer_spec(edge['wo']),
            pl.BlockSpec(memory_space=pltpu.MemorySpace.SMEM),   # bo scalars (num_layer,)
            layer_spec(node['wn']), layer_spec(node['bn']),
            layer_spec(node['wr']), layer_spec(node['br']),
            layer_spec(node['emb']),
        ],
        out_specs=(pl.BlockSpec((m, d), full2), pl.BlockSpec((1, d), full2)),
        compiler_params=pltpu.CompilerParams(dimension_semantics=("arbitrary",)),
    )(input_emb0, a_static, w_static, inv_deg, p_mat, q_mat, pt_mat,
      edge['w0'], edge['w1'], edge['w2'], edge['wo'], edge['bo'],
      node['wn'], node['bn'], node['wr'], node['br'], node['emb'])


# --------------------------------------------------------------------------------------
# Graph connector (glue, built once, hoisted out of the layer loop).
# TODO(synk): InductiveGraphConnector source is not provided; this is a simplified,
# deterministic connector (support label -> type 1/2, query -> type 3, sample<->sample
# -> type 0); nan_w / nan_type handling is not reproduced.
# --------------------------------------------------------------------------------------
def connect_task_and_sample(support_y, query_y, n_task):
    n_s = support_y.shape[0]
    n_q = query_y.shape[0]
    sup_nodes = n_task + jnp.arange(n_s, dtype=jnp.int32)
    qry_nodes = n_task + n_s + jnp.arange(n_q, dtype=jnp.int32)
    tgt_s_idx = jnp.stack([jnp.tile(sup_nodes, n_q), jnp.repeat(qry_nodes, n_s)], axis=1)
    tgt_q_idx = jnp.stack([qry_nodes, jnp.zeros((n_q,), jnp.int32)], axis=1)
    tgt_s_y = jnp.broadcast_to(support_y[:, 0].reshape(1, n_s), (n_q, n_s))
    tgt_q_y = query_y[:, :1]
    sup_types = 1 + support_y.astype(jnp.int32).T                  # [n_task, n_s] in {1,2}
    qry_types = jnp.full((n_task, n_q), 3, dtype=jnp.int32)
    ts_types = jnp.concatenate([sup_types, qry_types], axis=1)     # [n_task, n_s+n_q]
    return tgt_s_y, tgt_q_y, tgt_s_idx, tgt_q_idx, ts_types


def build_static_graph_ops(ts_types, n_task, n_sample):
    m = n_task + n_sample
    nn_pairs = n_sample * n_sample
    # unit-weight task<->sample edges
    a_static = jnp.zeros((m, m), jnp.float32)
    a_static = a_static.at[:n_task, n_task:].set(1.0)
    a_static = a_static.at[n_task:, :n_task].set(1.0)
    # per-bond-type weighted degree of static edges: (w_static @ emb)[i] == sum_j emb[t_ij]
    onehot_ts = jax.nn.one_hot(ts_types, NUM_BOND_TYPE, dtype=jnp.float32)  # [n_task, n_sample, 4]
    w_static = jnp.zeros((m, NUM_BOND_TYPE), jnp.float32)
    w_static = w_static.at[:n_task, :].set(jnp.sum(onehot_ts, axis=1))
    w_static = w_static.at[n_task:, :].set(jnp.sum(onehot_ts, axis=0))
    # mean-aggregation degree (edge count per destination node) — static
    deg = jnp.concatenate([jnp.full((n_task, 1), float(n_sample), jnp.float32),
                           jnp.full((n_sample, 1), float(n_task + n_sample - 1), jnp.float32)],
                          axis=0)
    inv_deg = 1.0 / jnp.maximum(deg, 1.0)
    # pair gather / scatter operators for the flattened pair index p = i * n + j
    pair = jnp.arange(nn_pairs, dtype=jnp.int32)
    p_mat = jax.nn.one_hot(pair // n_sample, n_sample, dtype=jnp.float32)   # picks x_i
    q_mat = jax.nn.one_hot(pair % n_sample, n_sample, dtype=jnp.float32)    # picks x_j
    pt_mat = jnp.concatenate([jnp.zeros((n_task, nn_pairs), jnp.float32), p_mat.T], axis=0)
    return a_static, w_static, inv_deg, p_mat, q_mat, pt_mat


# --------------------------------------------------------------------------------------
# Context_Encoder.forward_inductive
# (dropout=0 / pre_dropout=0 / batch_norm=False -> inactive branches; top_k = -1 so the
#  torch.topk branch is skipped; graph_pooling head is unused by forward_inductive.)
# --------------------------------------------------------------------------------------
def context_encoder_forward_inductive(params, sample_emb, task_id, support_y, query_y,
                                      num_layer):
    n_task = support_y.shape[1]
    n_s = support_y.shape[0]
    n_q = query_y.shape[0]
    n_sample = n_s + n_q
    task_emb = params['task_emb'][task_id]                                   # [n_task, d]
    tgt_s_y, tgt_q_y, tgt_s_idx, tgt_q_idx, ts_types = connect_task_and_sample(
        support_y, query_y, n_task)
    static_ops = build_static_graph_ops(ts_types, n_task, n_sample)          # hoisted glue
    input_emb0 = jnp.concatenate([task_emb, sample_emb], axis=0)             # [M, d]
    input_emb, graph_emb = fused_context_layers(                             # single Pallas call
        params, input_emb0, static_ops, num_layer, n_task, n_s)
    support_context = jnp.concatenate(
        [input_emb[tgt_s_idx[:, 0]], input_emb[tgt_s_idx[:, 1]]], axis=-1)
    query_context = jnp.concatenate(
        [input_emb[tgt_q_idx[:, 0]], input_emb[tgt_q_idx[:, 1]]], axis=-1)
    task_context = input_emb[0, :]
    support_mol_context = input_emb[tgt_s_idx[:, 0]]
    query_mol_context = input_emb[tgt_q_idx[:, 0]]
    return (tgt_s_y, tgt_q_y, graph_emb.reshape(-1), task_context,
            support_mol_context, query_mol_context, support_context, query_context)


# --------------------------------------------------------------------------------------
# Deterministic parameter init (shapes follow the PyTorch __init__, stacked per layer)
# --------------------------------------------------------------------------------------
def init_params(key, in_dim, edge_hidden_dim, num_layer, total_tasks, train_tasks):
    ks = jax.random.split(key, 11)

    def dense(k, shape, fan_in):
        bound = 1.0 / (fan_in ** 0.5)
        return jax.random.uniform(k, shape, jnp.float32, -bound, bound)

    task_w = jax.random.normal(ks[0], (total_tasks, in_dim), jnp.float32)
    task_w = task_w.at[train_tasks:, :].set(0.0)      # task_emb.weight[train_tasks:] = 0
    h = edge_hidden_dim
    layers = num_layer
    edge = {                                            # edge_n_layer = 3 -> dims [2h, h, h]
        'w0': dense(ks[1], (layers, in_dim, 2 * h), in_dim),
        'w1': dense(ks[2], (layers, 2 * h, h), 2 * h),
        'w2': dense(ks[3], (layers, h, h), h),
        'wo': dense(ks[4], (layers, 1, h), h),          # conv_out weight stored as a row
        'bo': dense(ks[5], (layers,), h),               # conv_out bias (scalar per layer)
    }
    node = {
        'wn': dense(ks[6], (layers, in_dim, in_dim), in_dim),
        'bn': dense(ks[7], (layers, 1, in_dim), in_dim),
        'wr': dense(ks[8], (layers, in_dim, in_dim), in_dim),
        'br': dense(ks[9], (layers, 1, in_dim), in_dim),
        'emb': jax.random.normal(ks[10], (layers, NUM_BOND_TYPE, in_dim), jnp.float32) * 0.1,
    }
    return {'task_emb': task_w, 'edge': edge, 'node': node}


if __name__ == "__main__":
    in_dim = 128
    edge_hidden_dim = 32
    num_layer = 2
    total_tasks, train_tasks = 4, 3
    n_task, n_s, n_q = 2, 6, 2        # small shapes; real code uses e.g. n_s=20, n_q=16, d=300

    key = jax.random.PRNGKey(0)
    k_par, k_emb, k_sy, k_qy = jax.random.split(key, 4)
    params = init_params(k_par, in_dim, edge_hidden_dim, num_layer, total_tasks, train_tasks)

    sample_emb = jax.random.normal(k_emb, (n_s + n_q, in_dim), jnp.float32)  # supports then queries
    task_id = jnp.array([0, 1], dtype=jnp.int32)
    support_y = (jax.random.uniform(k_sy, (n_s, n_task)) > 0.5).astype(jnp.float32)
    query_y = (jax.random.uniform(k_qy, (n_q, n_task)) > 0.5).astype(jnp.float32)

    forward = jax.jit(functools.partial(context_encoder_forward_inductive,
                                        num_layer=num_layer))
    outs = forward(params, sample_emb, task_id, support_y, query_y)
    for o in jax.tree_util.tree_leaves(outs):
        jax.block_until_ready(o)
    print("KERNEL_OK")
</pallas_src>

<mosaic_0001>
module attributes {stable_mosaic.version = 11 : i64} {
  func.func @fused_layer_kernel(%arg0: i32, %arg1: memref<10x128xf32, #tpu.memory_space<vmem>>, %arg2: memref<10x10xf32, #tpu.memory_space<vmem>>, %arg3: memref<10x4xf32, #tpu.memory_space<vmem>>, %arg4: memref<10x1xf32, #tpu.memory_space<vmem>>, %arg5: memref<64x8xf32, #tpu.memory_space<vmem>>, %arg6: memref<64x8xf32, #tpu.memory_space<vmem>>, %arg7: memref<10x64xf32, #tpu.memory_space<vmem>>, %arg8: memref<1x128x64xf32, #tpu.memory_space<vmem>>, %arg9: memref<1x64x32xf32, #tpu.memory_space<vmem>>, %arg10: memref<1x32x32xf32, #tpu.memory_space<vmem>>, %arg11: memref<1x1x32xf32, #tpu.memory_space<vmem>>, %arg12: memref<2xf32, #tpu.memory_space<smem>>, %arg13: memref<1x128x128xf32, #tpu.memory_space<vmem>>, %arg14: memref<1x1x128xf32, #tpu.memory_space<vmem>>, %arg15: memref<1x128x128xf32, #tpu.memory_space<vmem>>, %arg16: memref<1x1x128xf32, #tpu.memory_space<vmem>>, %arg17: memref<1x4x128xf32, #tpu.memory_space<vmem>>, %arg18: memref<10x128xf32, #tpu.memory_space<vmem>>, %arg19: memref<1x128xf32, #tpu.memory_space<vmem>>) attributes {dimension_semantics = [#tpu.dimension_semantics<arbitrary>], iteration_bounds = array<i64: 2>, scalar_prefetch = 0 : i64, scratch_operands = 0 : i64, tpu.core_type = #tpu.core_type<tc>, window_params = [{pipeline_mode = #tpu.pipeline_mode<synchronous>, transform_indices = @transform_0, window_bounds = array<i64: 10, 128>}, {pipeline_mode = #tpu.pipeline_mode<synchronous>, transform_indices = @transform_1, window_bounds = array<i64: 10, 10>}, {pipeline_mode = #tpu.pipeline_mode<synchronous>, transform_indices = @transform_2, window_bounds = array<i64: 10, 4>}, {pipeline_mode = #tpu.pipeline_mode<synchronous>, transform_indices = @transform_3, window_bounds = array<i64: 10, 1>}, {pipeline_mode = #tpu.pipeline_mode<synchronous>, transform_indices = @transform_4, window_bounds = array<i64: 64, 8>}, {pipeline_mode = #tpu.pipeline_mode<synchronous>, transform_indices = @transform_5, window_bounds = array<i64: 64, 8>}, {pipeline_mode = #tpu.pipeline_mode<synchronous>, transform_indices = @transform_6, window_bounds = array<i64: 10, 64>}, {transform_indices = @transform_7, window_bounds = array<i64: 1, 128, 64>}, {transform_indices = @transform_8, window_bounds = array<i64: 1, 64, 32>}, {transform_indices = @transform_9, window_bounds = array<i64: 1, 32, 32>}, {transform_indices = @transform_10, window_bounds = array<i64: 1, 1, 32>}, {transform_indices = @transform_11, window_bounds = array<i64: 2>}, {transform_indices = @transform_12, window_bounds = array<i64: 1, 128, 128>}, {transform_indices = @transform_13, window_bounds = array<i64: 1, 1, 128>}, {transform_indices = @transform_14, window_bounds = array<i64: 1, 128, 128>}, {transform_indices = @transform_15, window_bounds = array<i64: 1, 1, 128>}, {transform_indices = @transform_16, window_bounds = array<i64: 1, 4, 128>}, {pipeline_mode = #tpu.pipeline_mode<synchronous>, transform_indices = @transform_17, window_bounds = array<i64: 10, 128>}, {pipeline_mode = #tpu.pipeline_mode<synchronous>, transform_indices = @transform_18, window_bounds = array<i64: 1, 128>}]} {
    %c0_i32 = arith.constant 0 : i32
    %0 = arith.cmpi eq, %arg0, %c0_i32 : i32
    %1 = arith.extui %0 : i1 to i32
    %c0_i32_0 = arith.constant 0 : i32
    %2 = arith.cmpi ne, %1, %c0_i32_0 : i32
    scf.if %2 {
      %c0_76 = arith.constant 0 : index
      %c0_77 = arith.constant 0 : index
      %130 = vector.load %arg1[%c0_76, %c0_77] : memref<10x128xf32, #tpu.memory_space<vmem>>, vector<10x128xf32>
      %c0_78 = arith.constant 0 : index
      %c0_79 = arith.constant 0 : index
      %131 = vector.load %arg18[%c0_78, %c0_79] : memref<10x128xf32, #tpu.memory_space<vmem>>, vector<10x128xf32>
      tpu.vector_store %arg18[%c0_78, %c0_79], %130 {strides = array<i32>} : memref<10x128xf32, #tpu.memory_space<vmem>>, vector<10x128xf32>,
    } else {
    }
    %c0 = arith.constant 0 : index
    %c0_1 = arith.constant 0 : index
    %3 = vector.load %arg18[%c0, %c0_1] : memref<10x128xf32, #tpu.memory_space<vmem>>, vector<10x128xf32>
    %4 = vector.extract_strided_slice %3 {offsets = [2, 0], sizes = [8, 128], strides = [1, 1]} : vector<10x128xf32> to vector<8x128xf32>
    %c0_2 = arith.constant 0 : index
    %c0_3 = arith.constant 0 : index
    %5 = vector.load %arg5[%c0_2, %c0_3] : memref<64x8xf32, #tpu.memory_space<vmem>>, vector<64x8xf32>
    %cst = arith.constant dense<0.000000e+00> : vector<64x128xf32>
    %6 = tpu.matmul %5, %4, %cst {dimension_numbers = #tpu.dot_dimension_numbers<[1], [0], [0], [1], [0, 0, 1, 1], [], []>} : vector<64x8xf32>, vector<8x128xf32>, vector<64x128xf32> -> vector<64x128xf32>
    %c0_4 = arith.constant 0 : index
    %c0_5 = arith.constant 0 : index
    %7 = vector.load %arg6[%c0_4, %c0_5] : memref<64x8xf32, #tpu.memory_space<vmem>>, vector<64x8xf32>
    %cst_6 = arith.constant dense<0.000000e+00> : vector<64x128xf32>
    %8 = tpu.matmul %7, %4, %cst_6 {dimension_numbers = #tpu.dot_dimension_numbers<[1], [0], [0], [1], [0, 0, 1, 1], [], []>} : vector<64x8xf32>, vector<8x128xf32>, vector<64x128xf32> -> vector<64x128xf32>
    %9 = arith.subf %6, %8 : vector<64x128xf32>
    %10 = math.absf %9 : vector<64x128xf32>
    %cst_7 = arith.constant 0.000000e+00 : f32
    %11 = vector.broadcast %cst_7 : f32 to vector<64x128xf32>
    %12 = arith.subf %11, %10 : vector<64x128xf32>
    %13 = math.exp %12 : vector<64x128xf32>
    %c0_8 = arith.constant 0 : index
    %c0_9 = arith.constant 0 : index
    %c0_10 = arith.constant 0 : index
    %14 = vector.load %arg8[%c0_8, %c0_9, %c0_10] : memref<1x128x64xf32, #tpu.memory_space<vmem>>, vector<1x128x64xf32>
    %15 = vector.shape_cast %14 : vector<1x128x64xf32> to vector<128x64xf32>
    %cst_11 = arith.constant dense<0.000000e+00> : vector<64x64xf32>
    %16 = tpu.matmul %13, %15, %cst_11 {dimension_numbers = #tpu.dot_dimension_numbers<[1], [0], [0], [1], [0, 0, 1, 1], [], []>} : vector<64x128xf32>, vector<128x64xf32>, vector<64x64xf32> -> vector<64x64xf32>
    %cst_12 = arith.constant 0.000000e+00 : f32
    %17 = vector.broadcast %cst_12 : f32 to vector<64x64xf32>
    %18 = arith.cmpf ogt, %16, %17 : vector<64x64xf32>
    %cst_13 = arith.constant 0.00999999977 : f32
    %19 = vector.broadcast %cst_13 : f32 to vector<64x64xf32>
    %20 = arith.mulf %19, %16 : vector<64x64xf32>
    %21 = arith.select %18, %16, %20 : vector<64x64xi1>, vector<64x64xf32>
    %c0_14 = arith.constant 0 : index
    %c0_15 = arith.constant 0 : index
    %c0_16 = arith.constant 0 : index
    %22 = vector.load %arg9[%c0_14, %c0_15, %c0_16] : memref<1x64x32xf32, #tpu.memory_space<vmem>>, vector<1x64x32xf32>
    %23 = vector.shape_cast %22 : vector<1x64x32xf32> to vector<64x32xf32>
    %cst_17 = arith.constant dense<0.000000e+00> : vector<64x32xf32>
    %24 = tpu.matmul %21, %23, %cst_17 {dimension_numbers = #tpu.dot_dimension_numbers<[1], [0], [0], [1], [0, 0, 1, 1], [], []>} : vector<64x64xf32>, vector<64x32xf32>, vector<64x32xf32> -> vector<64x32xf32>
    %cst_18 = arith.constant 0.000000e+00 : f32
    %25 = vector.broadcast %cst_18 : f32 to vector<64x32xf32>
    %26 = arith.cmpf ogt, %24, %25 : vector<64x32xf32>
    %cst_19 = arith.constant 0.00999999977 : f32
    %27 = vector.broadcast %cst_19 : f32 to vector<64x32xf32>
    %28 = arith.mulf %27, %24 : vector<64x32xf32>
    %29 = arith.select %26, %24, %28 : vector<64x32xi1>, vector<64x32xf32>
    %c0_20 = arith.constant 0 : index
    %c0_21 = arith.constant 0 : index
    %c0_22 = arith.constant 0 : index
    %30 = vector.load %arg10[%c0_20, %c0_21, %c0_22] : memref<1x32x32xf32, #tpu.memory_space<vmem>>, vector<1x32x32xf32>
    %31 = vector.shape_cast %30 : vector<1x32x32xf32> to vector<32x32xf32>
    %cst_23 = arith.constant dense<0.000000e+00> : vector<64x32xf32>
    %32 = tpu.matmul %29, %31, %cst_23 {dimension_numbers = #tpu.dot_dimension_numbers<[1], [0], [0], [1], [0, 0, 1, 1], [], []>} : vector<64x32xf32>, vector<32x32xf32>, vector<64x32xf32> -> vector<64x32xf32>
    %cst_24 = arith.constant 0.000000e+00 : f32
    %33 = vector.broadcast %cst_24 : f32 to vector<64x32xf32>
    %34 = arith.cmpf ogt, %32, %33 : vector<64x32xf32>
    %cst_25 = arith.constant 0.00999999977 : f32
    %35 = vector.broadcast %cst_25 : f32 to vector<64x32xf32>
    %36 = arith.mulf %35, %32 : vector<64x32xf32>
    %37 = arith.select %34, %32, %36 : vector<64x32xi1>, vector<64x32xf32>
    %c0_26 = arith.constant 0 : index
    %c0_27 = arith.constant 0 : index
    %c0_28 = arith.constant 0 : index
    %38 = vector.load %arg11[%c0_26, %c0_27, %c0_28] : memref<1x1x32xf32, #tpu.memory_space<vmem>>, vector<1x1x32xf32>
    %39 = vector.shape_cast %38 : vector<1x1x32xf32> to vector<1x32xf32>
    %40 = vector.broadcast %39 : vector<1x32xf32> to vector<64x32xf32>
    %41 = arith.mulf %37, %40 : vector<64x32xf32>
    %cst_29 = arith.constant dense<0.000000e+00> : vector<64xf32>
    %42 = vector.multi_reduction <add>, %41, %cst_29 [1] : vector<64x32xf32> to vector<64xf32>
    %43 = vector.shape_cast %42 : vector<64xf32> to vector<64x1xf32>
    %44 = arith.index_cast %arg0 : i32 to index
    %45 = memref.load %arg12[%44] : memref<2xf32, #tpu.memory_space<smem>>
    %46 = vector.broadcast %45 : f32 to vector<64x1xf32>
    %47 = arith.addf %43, %46 : vector<64x1xf32>
    %48 = tpu.iota {dimensions = array<i32: 0>} : vector<64x1xi32>
    %c9_i32 = arith.constant 9 : i32
    %c0_i32_30 = arith.constant 0 : i32
    %49 = arith.cmpi eq, %c9_i32, %c0_i32_30 : i32
    %c1_i32 = arith.constant 1 : i32
    %50 = arith.select %49, %c1_i32, %c9_i32 : i32
    %51 = vector.broadcast %50 : i32 to vector<64x1xi32>
    %52 = arith.remsi %48, %51 : vector<64x1xi32>
    %c0_i32_31 = arith.constant 0 : i32
    %53 = vector.broadcast %c0_i32_31 : i32 to vector<64x1xi32>
    %54 = arith.cmpi ne, %52, %53 : vector<64x1xi32>
    %c0_i32_32 = arith.constant 0 : i32
    %55 = vector.broadcast %c0_i32_32 : i32 to vector<64x1xi32>
    %56 = arith.cmpi slt, %52, %55 : vector<64x1xi32>
    %c0_i32_33 = arith.constant 0 : i32
    %57 = arith.cmpi slt, %50, %c0_i32_33 : i32
    %58 = vector.broadcast %57 : i1 to vector<64x1xi1>
    %59 = vector.broadcast %58 : vector<64x1xi1> to vector<64x1xi1>
    %60 = arith.xori %56, %59 : vector<64x1xi1>
    %61 = arith.andi %60, %54 : vector<64x1xi1>
    %62 = vector.broadcast %50 : i32 to vector<64x1xi32>
    %63 = arith.addi %52, %62 : vector<64x1xi32>
    %64 = arith.select %61, %63, %52 : vector<64x1xi1>, vector<64x1xi32>
    %c0_i32_34 = arith.constant 0 : i32
    %65 = vector.broadcast %c0_i32_34 : i32 to vector<64x1xi32>
    %66 = arith.cmpi ne, %64, %65 : vector<64x1xi32>
    %67 = arith.extui %66 : vector<64x1xi1> to vector<64x1xi32>
    %68 = arith.sitofp %67 : vector<64x1xi32> to vector<64x1xf32>
    %69 = arith.negf %47 : vector<64x1xf32>
    %70 = math.exp %69 : vector<64x1xf32>
    %cst_35 = arith.constant 1.000000e+00 : f32
    %71 = vector.broadcast %cst_35 : f32 to vector<64x1xf32>
    %72 = arith.addf %71, %70 : vector<64x1xf32>
    %73 = arith.divf %71, %72 : vector<64x1xf32>
    %74 = arith.mulf %73, %68 : vector<64x1xf32>
    %c0_36 = arith.constant 0 : index
    %c0_37 = arith.constant 0 : index
    %c0_38 = arith.constant 0 : index
    %75 = vector.load %arg13[%c0_36, %c0_37, %c0_38] : memref<1x128x128xf32, #tpu.memory_space<vmem>>, vector<1x128x128xf32>
    %76 = vector.shape_cast %75 : vector<1x128x128xf32> to vector<128x128xf32>
    %cst_39 = arith.constant dense<0.000000e+00> : vector<10x128xf32>
    %77 = tpu.matmul %3, %76, %cst_39 {dimension_numbers = #tpu.dot_dimension_numbers<[1], [0], [0], [1], [0, 0, 1, 1], [], []>} : vector<10x128xf32>, vector<128x128xf32>, vector<10x128xf32> -> vector<10x128xf32>
    %c0_40 = arith.constant 0 : index
    %c0_41 = arith.constant 0 : index
    %c0_42 = arith.constant 0 : index
    %78 = vector.load %arg14[%c0_40, %c0_41, %c0_42] : memref<1x1x128xf32, #tpu.memory_space<vmem>>, vector<1x1x128xf32>
    %79 = vector.shape_cast %78 : vector<1x1x128xf32> to vector<1x128xf32>
    %80 = vector.broadcast %79 : vector<1x128xf32> to vector<10x128xf32>
    %81 = arith.addf %77, %80 : vector<10x128xf32>
    %c0_43 = arith.constant 0 : index
    %c0_44 = arith.constant 0 : index
    %c0_45 = arith.constant 0 : index
    %82 = vector.load %arg15[%c0_43, %c0_44, %c0_45] : memref<1x128x128xf32, #tpu.memory_space<vmem>>, vector<1x128x128xf32>
    %83 = vector.shape_cast %82 : vector<1x128x128xf32> to vector<128x128xf32>
    %cst_46 = arith.constant dense<0.000000e+00> : vector<10x128xf32>
    %84 = tpu.matmul %3, %83, %cst_46 {dimension_numbers = #tpu.dot_dimension_numbers<[1], [0], [0], [1], [0, 0, 1, 1], [], []>} : vector<10x128xf32>, vector<128x128xf32>, vector<10x128xf32> -> vector<10x128xf32>
    %c0_47 = arith.constant 0 : index
    %c0_48 = arith.constant 0 : index
    %c0_49 = arith.constant 0 : index
    %85 = vector.load %arg16[%c0_47, %c0_48, %c0_49] : memref<1x1x128xf32, #tpu.memory_space<vmem>>, vector<1x1x128xf32>
    %86 = vector.shape_cast %85 : vector<1x1x128xf32> to vector<1x128xf32>
    %87 = vector.broadcast %86 : vector<1x128xf32> to vector<10x128xf32>
    %88 = arith.addf %84, %87 : vector<10x128xf32>
    %c0_50 = arith.constant 0 : index
    %c0_51 = arith.constant 0 : index
    %c0_52 = arith.constant 0 : index
    %89 = vector.load %arg17[%c0_50, %c0_51, %c0_52] : memref<1x4x128xf32, #tpu.memory_space<vmem>>, vector<1x4x128xf32>
    %90 = vector.shape_cast %89 : vector<1x4x128xf32> to vector<4x128xf32>
    %c0_53 = arith.constant 0 : index
    %c0_54 = arith.constant 0 : index
    %91 = vector.load %arg2[%c0_53, %c0_54] : memref<10x10xf32, #tpu.memory_space<vmem>>, vector<10x10xf32>
    %cst_55 = arith.constant dense<0.000000e+00> : vector<10x128xf32>
    %92 = tpu.matmul %91, %81, %cst_55 {dimension_numbers = #tpu.dot_dimension_numbers<[1], [0], [0], [1], [0, 0, 1, 1], [], []>} : vector<10x10xf32>, vector<10x128xf32>, vector<10x128xf32> -> vector<10x128xf32>
    %c0_56 = arith.constant 0 : index
    %c0_57 = arith.constant 0 : index
    %93 = vector.load %arg3[%c0_56, %c0_57] : memref<10x4xf32, #tpu.memory_space<vmem>>, vector<10x4xf32>
    %cst_58 = arith.constant dense<0.000000e+00> : vector<10x128xf32>
    %94 = tpu.matmul %93, %90, %cst_58 {dimension_numbers = #tpu.dot_dimension_numbers<[1], [0], [0], [1], [0, 0, 1, 1], [], []>} : vector<10x4xf32>, vector<4x128xf32>, vector<10x128xf32> -> vector<10x128xf32>
    %95 = arith.addf %92, %94 : vector<10x128xf32>
    %c0_59 = arith.constant 0 : index
    %c0_60 = arith.constant 0 : index
    %96 = vector.load %arg6[%c0_59, %c0_60] : memref<64x8xf32, #tpu.memory_space<vmem>>, vector<64x8xf32>
    %97 = vector.extract_strided_slice %81 {offsets = [2, 0], sizes = [8, 128], strides = [1, 1]} : vector<10x128xf32> to vector<8x128xf32>
    %cst_61 = arith.constant dense<0.000000e+00> : vector<64x128xf32>
    %98 = tpu.matmul %96, %97, %cst_61 {dimension_numbers = #tpu.dot_dimension_numbers<[1], [0], [0], [1], [0, 0, 1, 1], [], []>} : vector<64x8xf32>, vector<8x128xf32>, vector<64x128xf32> -> vector<64x128xf32>
    %c0_62 = arith.constant 0 : index
    %c0_63 = arith.constant 0 : index
    %99 = vector.load %arg7[%c0_62, %c0_63] : memref<10x64xf32, #tpu.memory_space<vmem>>, vector<10x64xf32>
    %100 = vector.extract_strided_slice %90 {offsets = [0, 0], sizes = [1, 128], strides = [1, 1]} : vector<4x128xf32> to vector<1x128xf32>
    %101 = vector.broadcast %100 : vector<1x128xf32> to vector<64x128xf32>
    %102 = arith.addf %98, %101 : vector<64x128xf32>
    %103 = vector.broadcast %74 : vector<64x1xf32> to vector<64x128xf32>
    %104 = arith.mulf %103, %102 : vector<64x128xf32>
    %cst_64 = arith.constant dense<0.000000e+00> : vector<10x128xf32>
    %105 = tpu.matmul %99, %104, %cst_64 {dimension_numbers = #tpu.dot_dimension_numbers<[1], [0], [0], [1], [0, 0, 1, 1], [], []>} : vector<10x64xf32>, vector<64x128xf32>, vector<10x128xf32> -> vector<10x128xf32>
    %106 = arith.addf %95, %105 : vector<10x128xf32>
    %c0_65 = arith.constant 0 : index
    %c0_66 = arith.constant 0 : index
    %107 = vector.load %arg4[%c0_65, %c0_66] : memref<10x1xf32, #tpu.memory_space<vmem>>, vector<10x1xf32>
    %108 = vector.broadcast %107 : vector<10x1xf32> to vector<10x128xf32>
    %109 = arith.mulf %106, %108 : vector<10x128xf32>
    %110 = arith.addf %109, %88 : vector<10x128xf32>
    %cst_67 = arith.constant 0.000000e+00 : f32
    %111 = vector.broadcast %cst_67 : f32 to vector<10x128xf32>
    %112 = arith.cmpf ogt, %110, %111 : vector<10x128xf32>
    %cst_68 = arith.constant 0.00999999977 : f32
    %113 = vector.broadcast %cst_68 : f32 to vector<10x128xf32>
    %114 = arith.mulf %113, %110 : vector<10x128xf32>
    %115 = arith.select %112, %110, %114 : vector<10x128xi1>, vector<10x128xf32>
    %c0_69 = arith.constant 0 : index
    %c0_70 = arith.constant 0 : index
    %116 = vector.load %arg18[%c0_69, %c0_70] : memref<10x128xf32, #tpu.memory_space<vmem>>, vector<10x128xf32>
    tpu.vector_store %arg18[%c0_69, %c0_70], %115 {strides = array<i32>} : memref<10x128xf32, #tpu.memory_space<vmem>>, vector<10x128xf32>,
    %117 = vector.extract_strided_slice %115 {offsets = [0, 0], sizes = [1, 128], strides = [1, 1]} : vector<10x128xf32> to vector<1x128xf32>
    %118 = vector.extract_strided_slice %115 {offsets = [2, 0], sizes = [6, 128], strides = [1, 1]} : vector<10x128xf32> to vector<6x128xf32>
    %cst_71 = arith.constant dense<0.000000e+00> : vector<128xf32>
    %119 = vector.multi_reduction <add>, %118, %cst_71 [0] : vector<6x128xf32> to vector<128xf32>
    %120 = vector.shape_cast %119 : vector<128xf32> to vector<1x128xf32>
    %cst_72 = arith.constant 6.000000e+00 : f32
    %121 = vector.broadcast %cst_72 : f32 to vector<1x128xf32>
    %122 = arith.divf %120, %121 : vector<1x128xf32>
    %123 = arith.negf %122 : vector<1x128xf32>
    %124 = math.exp %123 : vector<1x128xf32>
    %cst_73 = arith.constant 1.000000e+00 : f32
    %125 = vector.broadcast %cst_73 : f32 to vector<1x128xf32>
    %126 = arith.addf %125, %124 : vector<1x128xf32>
    %127 = arith.divf %125, %126 : vector<1x128xf32>
    %128 = arith.addf %117, %127 : vector<1x128xf32>
    %c0_74 = arith.constant 0 : index
    %c0_75 = arith.constant 0 : index
    %129 = vector.load %arg19[%c0_74, %c0_75] : memref<1x128xf32, #tpu.memory_space<vmem>>, vector<1x128xf32>
    tpu.vector_store %arg19[%c0_74, %c0_75], %128 {strides = array<i32>} : memref<1x128xf32, #tpu.memory_space<vmem>>, vector<1x128xf32>,
    return
  }
  func.func @transform_0(%arg0: i32) -> (i32, i32) {
    %c0_i32 = arith.constant 0 : i32
    %c0_i32_0 = arith.constant 0 : i32
    %c0_i32_1 = arith.constant 0 : i32
    return %c0_i32, %c0_i32_0 : i32, i32
  }
  func.func @transform_1(%arg0: i32) -> (i32, i32) {
    %c0_i32 = arith.constant 0 : i32
    %c0_i32_0 = arith.constant 0 : i32
    %c0_i32_1 = arith.constant 0 : i32
    return %c0_i32, %c0_i32_0 : i32, i32
  }
  func.func @transform_2(%arg0: i32) -> (i32, i32) {
    %c0_i32 = arith.constant 0 : i32
    %c0_i32_0 = arith.constant 0 : i32
    %c0_i32_1 = arith.constant 0 : i32
    return %c0_i32, %c0_i32_0 : i32, i32
  }
  func.func @transform_3(%arg0: i32) -> (i32, i32) {
    %c0_i32 = arith.constant 0 : i32
    %c0_i32_0 = arith.constant 0 : i32
    %c0_i32_1 = arith.constant 0 : i32
    return %c0_i32, %c0_i32_0 : i32, i32
  }
  func.func @transform_4(%arg0: i32) -> (i32, i32) {
    %c0_i32 = arith.constant 0 : i32
    %c0_i32_0 = arith.constant 0 : i32
    %c0_i32_1 = arith.constant 0 : i32
    return %c0_i32, %c0_i32_0 : i32, i32
  }
  func.func @transform_5(%arg0: i32) -> (i32, i32) {
    %c0_i32 = arith.constant 0 : i32
    %c0_i32_0 = arith.constant 0 : i32
    %c0_i32_1 = arith.constant 0 : i32
    return %c0_i32, %c0_i32_0 : i32, i32
  }
  func.func @transform_6(%arg0: i32) -> (i32, i32) {
    %c0_i32 = arith.constant 0 : i32
    %c0_i32_0 = arith.constant 0 : i32
    %c0_i32_1 = arith.constant 0 : i32
    return %c0_i32, %c0_i32_0 : i32, i32
  }
  func.func @transform_7(%arg0: i32) -> (i32, i32, i32) {
    %c0_i32 = arith.constant 0 : i32
    %c0_i32_0 = arith.constant 0 : i32
    %c0_i32_1 = arith.constant 0 : i32
    return %arg0, %c0_i32, %c0_i32_0 : i32, i32, i32
  }
  func.func @transform_8(%arg0: i32) -> (i32, i32, i32) {
    %c0_i32 = arith.constant 0 : i32
    %c0_i32_0 = arith.constant 0 : i32
    %c0_i32_1 = arith.constant 0 : i32
    return %arg0, %c0_i32, %c0_i32_0 : i32, i32, i32
  }
  func.func @transform_9(%arg0: i32) -> (i32, i32, i32) {
    %c0_i32 = arith.constant 0 : i32
    %c0_i32_0 = arith.constant 0 : i32
    %c0_i32_1 = arith.constant 0 : i32
    return %arg0, %c0_i32, %c0_i32_0 : i32, i32, i32
  }
  func.func @transform_10(%arg0: i32) -> (i32, i32, i32) {
    %c0_i32 = arith.constant 0 : i32
    %c0_i32_0 = arith.constant 0 : i32
    %c0_i32_1 = arith.constant 0 : i32
    return %arg0, %c0_i32, %c0_i32_0 : i32, i32, i32
  }
  func.func @transform_11(%arg0: i32) -> i32 {
    %c0_i32 = arith.constant 0 : i32
    %c0_i32_0 = arith.constant 0 : i32
    return %c0_i32 : i32
  }
  func.func @transform_12(%arg0: i32) -> (i32, i32, i32) {
    %c0_i32 = arith.constant 0 : i32
    %c0_i32_0 = arith.constant 0 : i32
    %c0_i32_1 = arith.constant 0 : i32
    return %arg0, %c0_i32, %c0_i32_0 : i32, i32, i32
  }
  func.func @transform_13(%arg0: i32) -> (i32, i32, i32) {
    %c0_i32 = arith.constant 0 : i32
    %c0_i32_0 = arith.constant 0 : i32
    %c0_i32_1 = arith.constant 0 : i32
    return %arg0, %c0_i32, %c0_i32_0 : i32, i32, i32
  }
  func.func @transform_14(%arg0: i32) -> (i32, i32, i32) {
    %c0_i32 = arith.constant 0 : i32
    %c0_i32_0 = arith.constant 0 : i32
    %c0_i32_1 = arith.constant 0 : i32
    return %arg0, %c0_i32, %c0_i32_0 : i32, i32, i32
  }
  func.func @transform_15(%arg0: i32) -> (i32, i32, i32) {
    %c0_i32 = arith.constant 0 : i32
    %c0_i32_0 = arith.constant 0 : i32
    %c0_i32_1 = arith.constant 0 : i32
    return %arg0, %c0_i32, %c0_i32_0 : i32, i32, i32
  }
  func.func @transform_16(%arg0: i32) -> (i32, i32, i32) {
    %c0_i32 = arith.constant 0 : i32
    %c0_i32_0 = arith.constant 0 : i32
    %c0_i32_1 = arith.constant 0 : i32
    return %arg0, %c0_i32, %c0_i32_0 : i32, i32, i32
  }
  func.func @transform_17(%arg0: i32) -> (i32, i32) {
    %c0_i32 = arith.constant 0 : i32
    %c0_i32_0 = arith.constant 0 : i32
    %c0_i32_1 = arith.constant 0 : i32
    return %c0_i32, %c0_i32_0 : i32, i32
  }
  func.func @transform_18(%arg0: i32) -> (i32, i32) {
    %c0_i32 = arith.constant 0 : i32
    %c0_i32_0 = arith.constant 0 : i32
    %c0_i32_1 = arith.constant 0 : i32
    return %c0_i32, %c0_i32_0 : i32, i32
  }
}

</mosaic_0001>

<bundles_post_ra>
// kernel: tile.9
= control target key start
LH: loop header
LB: loop body
LE: loop exit
PB: predicated region body
PF: predicated region fallthrough
CT: control target
= control target key end

     0   :  { %s22_s0 = inlined_call_operand.vmem [shape: s32[6], index: 0, kind: input, shape index: {}]   ;;  %s23_s1 = inlined_call_operand.vmem [shape: s32[2,6], index: 1, kind: output, shape index: {}]  }
   0x1   :  { %v4_v0 = vld [vmem:[%s22_s0] ss:$0 sm:$0xff] }
   0x2   :  { %5 = vst [vmem:[%s23_s1] sm:$0x3] %v4_v0 }

// kernel: context_encoder_forward_inductive.1
= control target key start
LH: loop header
LB: loop body
LE: loop exit
PB: predicated region body
PF: predicated region fallthrough
CT: control target
= control target key end

     0   :  { %s4053_s0 = inlined_call_operand.vmem [shape: f32[10,128], index: 0, kind: input, shape index: {}]   ;;  %s4054_s1 = inlined_call_operand.vmem [shape: f32[10,10], index: 1, kind: input, shape index: {}]   ;;  %s4055_s2 = inlined_call_operand.vmem [shape: f32[10,4], index: 2, kind: input, shape index: {}]   ;;  %s4056_s3 = inlined_call_operand.vmem [shape: f32[10,1], index: 3, kind: input, shape index: {}]   ;;  %s4057_s4 = inlined_call_operand.vmem [shape: f32[64,8], index: 4, kind: input, shape index: {}]   ;;  %s4058_s5 = inlined_call_operand.vmem [shape: f32[64,8], index: 5, kind: input, shape index: {}]   ;;  %s4059_s6 = inlined_call_operand.vmem [shape: f32[10,64], index: 6, kind: input, shape index: {}]   ;;  %s4060_s7 = inlined_call_operand.vmem [shape: f32[2,128,64], index: 7, kind: input, shape index: {}]   ;;  %s4061_s8 = inlined_call_operand.vmem [shape: f32[2,64,32], index: 8, kind: input, shape index: {}]   ;;  %s4062_s9 = inlined_call_operand.vmem [shape: f32[2,32,32], index: 9, kind: input, shape index: {}]   ;;  %s4063_s10 = inlined_call_operand.vmem [shape: f32[2,1,32], index: 10, kind: input, shape index: {}]   ;;  %s4064_s11 = inlined_call_operand.vmem [shape: f32[2], index: 11, kind: input, shape index: {}]   ;;  %s4065_s12 = inlined_call_operand.vmem [shape: f32[2,128,128], index: 12, kind: input, shape index: {}]   ;;  %s4066_s13 = inlined_call_operand.vmem [shape: f32[2,1,128], index: 13, kind: input, shape index: {}]   ;;  %s4067_s14 = inlined_call_operand.vmem [shape: f32[2,128,128], index: 14, kind: input, shape index: {}]   ;;  %s4068_s15 = inlined_call_operand.vmem [shape: f32[2,1,128], index: 15, kind: input, shape index: {}]   ;;  %s4069_s16 = inlined_call_operand.vmem [shape: f32[2,4,128], index: 16, kind: input, shape index: {}]   ;;  %s4070_s17 = inlined_call_operand.vmem [shape: f32[10,128], index: 17, kind: output, shape index: {0}]   ;;  %s4071_s18 = inlined_call_operand.hbm [shape: f32[1,128], index: 18, kind: output, shape index: {1}]  }
   0x1   :  { %4079 = sst [smem:[#allocation9_spill]] %s4053_s0 }
   0x2   :  { %4080 = sst [smem:[#allocation10_spill]] %s4054_s1 }
   0x3   :  { %4081 = sst [smem:[#allocation11_spill]] %s4055_s2 }
   0x4   :  { %4082 = sst [smem:[#allocation12_spill]] %s4056_s3 }
   0x5   :  { %4083 = sst [smem:[#allocation13_spill]] %s4059_s6 }
   0x6   :  { %4084 = sst [smem:[#allocation14_spill]] %s4060_s7 }
   0x7   :  { %4085 = sst [smem:[#allocation15_spill]] %s4061_s8 }
   0x8   :  { %4086 = sst [smem:[#allocation16_spill]] %s4064_s11 }
   0x9   :  { %4087 = sst [smem:[#allocation17_spill]] %s4071_s18 }
   0xa   :  { %24 = vsyncpa [#allocation4], 0 }
   0xb   :  { %25 = vsyncpa [#allocation3], 0  ;;  %s3415_s27 = smov 0  }
   0xc LB: > { %4088 = sst [smem:[#allocation8_spill]] %s3313_s27  ;;  %s3421_s28 = sadd.s32 4294967295, %s3313_s27   ;;  %s3313_s27 = sphi %s3415_s27, %s31_s27  }
   0xd   : > { %p2552_p0 = scmp.ge.s32.totalorder %s3313_s27, 1  ;;  %p480_p1 = scmp.lt.s32.totalorder %s3313_s27, 3 }
   0xe   : > { %s4089_s11 = sld [smem:[#allocation16_spill]]  ;;  %p3187_p4 = scmp.eq.s32.totalorder %s3421_s28, 0 }
   0xf   : > { %p3429_p3 = pnand %p2552_p0, %p480_p1 }
  0x11   : > { %p3183_p5 = pneg %p3429_p3 }
  0x13   : > { %p3184_p6 = pnand %p3187_p4, %p3183_p5 }
  0x14   : > { %s514_s0 = sshll.u32 %s4089_s11, 4  ;;  %s515_s0 = int_to_ptr.vmem [resolvable:$true] %s514_s0 }
  0x15   : > { %s3258_s1 = scalar_lea.vmem %s515_s0, 16  ;;  %p3260_p8 = pneg %p3184_p6 }
  0x16   : > { %p3259_p7 = scmp.ne.s32.totalorder %s515_s0, %s3258_s1  ;;  %p3266_p11 = scmp.lt.s32.totalorder %s515_s0, %s515_s0 }
  0x17   : > { %p3267_p12 = scmp.lt.s32.totalorder %s3258_s1, %s3258_s1 }
  0x18   : > { %p3261_p9 = pnand %p3260_p8, %p3259_p7 }
  0x19   : > { %p3268_p13 = por %p3267_p12, %p3266_p11 }
  0x1a   : > { %p3262_p10 = pneg %p3261_p9 }
  0x1c   : > { %p3269_p2 = pnand %p3268_p13, %p3262_p10 }
  0x1e   : > { %3272 = shalt.err (!%p3269_p2)
}
  0x1f   : > { %s3315_s20 = smov [#allocation2]   ;;  %592 = sbr.rel (%p3429_p3) target bundleno = 1434 (0x59a), region = 88 }
  0x20   : > { %3186 = dma.vmem_to_smem (!%p3184_p6), %s515_s0, 16, %s3315_s20, [#allocation4]  }
  0x26   : > { %3304 = dma.done.wait (%p3187_p4), [#allocation4], 16  }
  0x27   : > { %3306 = vsyncadd (%p3187_p4), [#allocation4], 4294967280 }
  0x28   : > { %598 = sfence }
  0x29   : > { %p675_p0 = scmp.lt.s32.totalorder %s3421_s28, 1  ;;  %s4091_s7 = sld [smem:[#allocation14_spill]] }
  0x2a   : > { %s4092_s8 = sld [smem:[#allocation15_spill]]  ;;  %p4093_p1 = scmp.ne.s32.totalorder %s3421_s28, 0 }
  0x2b   : > { %s3446_s21 = scalar_select %p675_p0, %s3421_s28, 1 }
  0x2c   : > { %716 = sbr.rel (%p4093_p1) target bundleno = 52 (0x34), region = 96  ;;  %s4094_s24 = sld [smem:[#allocation9_spill]] (!%p4093_p1) }
  0x2d   : > { %s2641_s22 = sshll.u32 %s3446_s21, 7  ;;  %s2642_s2 = sshll.u32 %s3446_s21, 6 }
  0x2e   : > { %s2643_s0 = sshll.u32 %s3446_s21, 5  ;;  %s3473_s23 = scalar_lea.vmem %s4065_s12, %s2641_s22 }
  0x2f   : > { %s3453_s25 = scalar_lea.vmem %s4091_s7, %s2641_s22  ;;  %s3468_s18 = scalar_lea.vmem %s4062_s9, %s2643_s0 }
  0x30   : > { %s3458_s30 = scalar_lea.vmem %s4092_s8, %s2642_s2  ;;  %s700_s2 = scalar_lea.vmem %s4066_s13, %s3446_s21 }
  0x31   : > { %s3482_s8 = scalar_lea.vmem %s4067_s14, %s2641_s22  ;;  %s2567_s27 = sshll.u32 %s3446_s21, 2 }
  0x32   : > { %s3492_s3 = scalar_lea.vmem %s4069_s16, %s2567_s27  ;;  %v717_v0 = vld [vmem:[%s4094_s24] sm:$0xff] (!%p4093_p1)  ;;  %v718_v1 = vld [vmem:[%s4094_s24 + $0x8] sm:$0x3] (!%p4093_p1) }
  0x33   : > { %719 = vst [vmem:[%s4070_s17] sm:$0xff] %v717_v0  ;;  %720 = vst [vmem:[%s4070_s17 + $0x8] sm:$0x3] %v718_v1 }
  0x34 PF: > { %vm733_vm0 = vcmask 1045504   ;;  %v723_v4 = vld [vmem:[%s4057_s4] sm:$0xff]  ;;  %vm738_vm1 = vcmask 64512   ;;  %v724_v9 = vld [vmem:[%s4057_s4 + $0x8] sm:$0xff]  ;;  %v725_v11 = vld [vmem:[%s4057_s4 + $0x10] sm:$0xff]  ;;  %vm1198_vm4 = vcmask 523264   ;;  %s4096_s26 = scalar_lea.vmem %s4063_s10, %s3446_s21  ;;  %s4122_s22 = scalar_lea.vmem %s4068_s15, %s3446_s21 }
  0x35   : > { %2780 = vmatprep.mubr.msk.f32.mxu0 %vm738_vm1, %v723_v4  ;;  %v3527_v7 = vld [vmem:[%s4058_s5] sm:$0xff]  ;;  %v3538_v10 = vld [vmem:[%s4058_s5 + $0x8] sm:$0xff]  ;;  %v3546_v12 = vld [vmem:[%s4058_s5 + $0x10] sm:$0xff]  ;;  %vm2070_vm11 = vcmask 1041408   ;;  %vm3316_vm12 = vmmov 1   ;;  %s4097_s29 = sld [smem:[#allocation10_spill]] }
  0x36   : > { %2794 = vmatprep.mubr.msk.f32.mxu1 %vm738_vm1, %v3527_v7  ;;  %v1045_v13 = vld [vmem:[%s3453_s25] sm:$0xff]  ;;  %v1046_v14 = vld [vmem:[%s3453_s25 + $0x8] sm:$0xff]  ;;  %v1047_v15 = vld [vmem:[%s3453_s25 + $0x10] sm:$0xff]  ;;  %s4098_s0 = sld [smem:[#allocation13_spill]]  ;;  %s3319_s27 = smov [#allocation5]  }
  0x37   : > { %v726_v16 = vld [vmem:[%s4057_s4 + $0x18] sm:$0xff]  ;;  %v3013_v18 = vpack.c.bf16 %v1046_v14, %v1045_v13  ;;  %v727_v20 = vld [vmem:[%s4057_s4 + $0x20] sm:$0xff]  ;;  %v1050_v24 = vld [vmem:[%s3453_s25 + $0x28] sm:$0xff]  ;;  %s1549_s6 = sld [smem:[#allocation2 + %s3421_s28]]  ;;  %p3189_p2 = scmp.eq.s32.totalorder %s3421_s28, 1 }
  0x38   : > { %v3563_v17 = vld [vmem:[%s4058_s5 + $0x18] sm:$0xff]  ;;  %v3572_v21 = vld [vmem:[%s4058_s5 + $0x20] sm:$0xff]  ;;  %v728_v25 = vld [vmem:[%s4057_s4 + $0x28] sm:$0xff] }
  0x39   : > { %v1048_v19 = vld [vmem:[%s3453_s25 + $0x18] sm:$0xff]  ;;  %v1049_v23 = vld [vmem:[%s3453_s25 + $0x20] sm:$0xff]  ;;  %v3588_v26 = vld [vmem:[%s4058_s5 + $0x28] sm:$0xff] }
  0x3a   : > { %v3511_v2 = vld [vmem:[%s4070_s17] sm:$0xff]  ;;  %v3516_v3 = vld [vmem:[%s4070_s17 + $0x8] sm:$0x3]  ;;  %v3017_v22 = vpack.c.bf16 %v1048_v19, %v1047_v15  ;;  %v729_v27 = vld [vmem:[%s4057_s4 + $0x30] sm:$0xff]  ;;  %v3021_v29 = vpack.c.bf16 %v1050_v24, %v1049_v23 }
  0x3b   : > { %v734_v5 = vrot.slane %v3511_v2, 2  ;;  %v735_v6 = vrot.slane %v3516_v3, 2  ;;  %v3596_v28 = vld [vmem:[%s4058_s5 + $0x30] sm:$0xff]  ;;  %v730_v30 = vld [vmem:[%s4057_s4 + $0x38] sm:$0xff]  ;;  %v1053_v35 = vld [vmem:[%s3453_s25 + $0x40] sm:$0xff] }
  0x3c   : > { %v3610_v31 = vld [vmem:[%s4058_s5 + $0x38] sm:$0xff]  ;;  %v1051_v32 = vld [vmem:[%s3453_s25 + $0x30] sm:$0xff]  ;;  %v1054_v36 = vld [vmem:[%s3453_s25 + $0x48] sm:$0xff] }
  0x3d   : > { %v736_v8 = vsel %vm733_vm0, %v734_v5, %v735_v6  ;;  %v1052_v33 = vld [vmem:[%s3453_s25 + $0x38] sm:$0xff]  ;;  %v3029_v37 = vpack.c.bf16 %v1054_v36, %v1053_v35  ;;  %v1055_v38 = vld [vmem:[%s3453_s25 + $0x50] sm:$0xff]  ;;  %v1057_v41 = vld [vmem:[%s3453_s25 + $0x60] sm:$0xff] }
  0x3e   : > { %2778 = vmatprep.subr.mxu0 %v736_v8  ;;  %2792 = vmatprep.subr.mxu1 %v736_v8  ;;  %v3025_v34 = vpack.c.bf16 %v1052_v33, %v1051_v32  ;;  %v1056_v39 = vld [vmem:[%s3453_s25 + $0x58] sm:$0xff]  ;;  %v1058_v42 = vld [vmem:[%s3453_s25 + $0x68] sm:$0xff]  ;;  %v1059_v44 = vld [vmem:[%s3453_s25 + $0x70] sm:$0xff] }
  0x3f   : > { %2779 = vmatpush3.msra.mxu0 %v736_v8  ;;  %2793 = vmatpush3.msra.mxu1 %v736_v8  ;;  %v3033_v40 = vpack.c.bf16 %v1056_v39, %v1055_v38  ;;  %v3037_v43 = vpack.c.bf16 %v1058_v42, %v1057_v41  ;;  %v1060_v45 = vld [vmem:[%s3453_s25 + $0x78] sm:$0xff]  ;;  %v1190_v47 = vld [vmem:[%s3458_s30] sm:$0xff]  ;;  %v1191_v48 = vld [vmem:[%s3458_s30 + $0x8] sm:$0xff] }
  0x40   : > { %2781 = vmatmul.mubr.msk.f32.vlgmr.msra.gmra.mrb[0].mxu0 %vm738_vm1, %v724_v9  ;;  %2795 = vmatmul.mubr.msk.f32.vlgmr.msra.gmra.mrb[0].mxu1 %vm738_vm1, %v3538_v10  ;;  %v3041_v46 = vpack.c.bf16 %v1060_v45, %v1059_v44  ;;  %v1192_v49 = vld [vmem:[%s3458_s30 + $0x10] sm:$0xff]  ;;  %v3045_v50 = vpack.c.bf16 %v1191_v48, %v1190_v47  ;;  %v1193_v51 = vld [vmem:[%s3458_s30 + $0x18] sm:$0xff]  ;;  %v1194_v53 = vld [vmem:[%s3458_s30 + $0x20] sm:$0xff] }
  0x41   : > { %2783 = vmatprep.mubr.msk.f32.mxu0 %vm738_vm1, %v725_v11  ;;  %2797 = vmatprep.mubr.msk.f32.mxu1 %vm738_vm1, %v3546_v12  ;;  %v3049_v52 = vpack.c.bf16 %v1193_v51, %v1192_v49  ;;  %v1195_v54 = vld [vmem:[%s3458_s30 + $0x28] sm:$0xff]  ;;  %vm3134_vm13 = vmpackc.low %vm2070_vm11, %vm3316_vm12  ;;  %vm1977_vm11 = vcmask 31744  }
  0x42   : > { %3014 = vmatprep.subr.bf16.mxu0 %v3013_v18  ;;  %3046 = vmatprep.subr.bf16.mxu1 %v3045_v50  ;;  %v3053_v55 = vpack.c.bf16 %v1195_v54, %v1194_v53 }
  0x43   : > { %3016 = vmatpush3.bf16.msra.mxu0 %v3013_v18  ;;  %3048 = vmatpush3.bf16.msra.mxu1 %v3045_v50 }
  0x44   : > { %2784 = vmatmul.mubr.msk.f32.gmra.mrb[2].mxu0 %vm738_vm1, %v726_v16  ;;  %2798 = vmatmul.mubr.msk.f32.gmra.mrb[2].mxu1 %vm738_vm1, %v3563_v17 }
  0x45   : > { %2786 = vmatprep.mubr.msk.f32.mxu0 %vm738_vm1, %v727_v20  ;;  %2800 = vmatprep.mubr.msk.f32.mxu1 %vm738_vm1, %v3572_v21 }
  0x46   : > { %3018 = vmatprep.subr.bf16.mxu0 %v3017_v22  ;;  %3050 = vmatprep.subr.bf16.mxu1 %v3049_v52 }
  0x47   : > { %3020 = vmatpush3.bf16.msra.mxu0 %v3017_v22  ;;  %3052 = vmatpush3.bf16.msra.mxu1 %v3049_v52 }
  0x48   : > { %2787 = vmatmul.mubr.msk.f32.gmra.mrb[4].mxu0 %vm738_vm1, %v728_v25  ;;  %2801 = vmatmul.mubr.msk.f32.gmra.mrb[4].mxu1 %vm738_vm1, %v3588_v26 }
  0x49   : > { %2789 = vmatprep.mubr.msk.f32.mxu0 %vm738_vm1, %v729_v27  ;;  %2803 = vmatprep.mubr.msk.f32.mxu1 %vm738_vm1, %v3596_v28 }
  0x4a   : > { %3022 = vmatprep.subr.bf16.mxu0 %v3021_v29  ;;  %3054 = vmatprep.subr.bf16.mxu1 %v3053_v55 }
  0x4b   : > { %3024 = vmatpush3.bf16.msra.mxu0 %v3021_v29  ;;  %3056 = vmatpush3.bf16.msra.mxu1 %v3053_v55 }
  0x4c   : > { %2790 = vmatmul.mubr.msk.f32.gmra.mrb[6].mxu0 %vm738_vm1, %v730_v30  ;;  %2804 = vmatmul.mubr.msk.f32.gmra.mrb[6].mxu1 %vm738_vm1, %v3610_v31 }
  0x4d   : > { %3026 = vmatprep.subr.bf16.mxu0 %v3025_v34 }
  0x4f   : > { %3028 = vmatpush3.bf16.msra.mxu0 %v3025_v34 }
  0x50   : > { %3030 = vmatprep.subr.bf16.mxu0 %v3029_v37 }
  0x53   : > { %3032 = vmatpush3.bf16.msra.mxu0 %v3029_v37 }
  0x54   : > { %3034 = vmatprep.subr.bf16.mxu0 %v3033_v40 }
  0x57   : > { %3036 = vmatpush3.bf16.msra.mxu0 %v3033_v40 }
  0x58   : > { %3038 = vmatprep.subr.bf16.mxu0 %v3037_v43 }
  0x5b   : > { %3040 = vmatpush3.bf16.msra.mxu0 %v3037_v43 }
  0x5c   : > { %3042 = vmatprep.subr.bf16.mxu0 %v3041_v46 }
  0x5f   : > { %3044 = vmatpush3.bf16.msra.mxu0 %v3041_v46 }
 0x113   : > { %v2782_v56 = vpop.f32.mrb[0].mxu0  ;;  %v2796_v57 = vpop.f32.mrb[0].mxu1 }
 0x114   : > { %v1006_v58 = vsub.f32 %v2782_v56, %v2796_v57  ;;  %v829_v59 = vpop.f32.mrb[1].mxu0  ;;  %v966_v60 = vpop.f32.mrb[1].mxu1 }
 0x115   : > { %v1005_v61 = vsub.f32 %v829_v59, %v966_v60  ;;  %v1197_v59 = vld [vmem:[%s3458_s30 + $0x38] sm:$0xff] }
 0x116   : > { %v1014_v62 = vand.u32 2147483647, %v1006_v58  ;;  %v1196_v58 = vld [vmem:[%s3458_s30 + $0x30] sm:$0xff]  ;;  %s4099_s30 = sld [smem:[#allocation12_spill]] }
 0x117   : > { %v1013_v63 = vand.u32 2147483647, %v1005_v61  ;;  %v2785_v0 = vpop.f32.mrb[2].mxu0  ;;  %v2799_v1 = vpop.f32.mrb[2].mxu1  ;;  %v3057_v60 = vpack.c.bf16 %v1197_v59, %v1196_v58  ;;  %v1776_v61 = vld [vmem:[%s3473_s23] sm:$0xff] }
 0x118   : > { %v1022_v4 = vsub.f32 0.0, %v1014_v62  ;;  %v1008_v5 = vsub.f32 %v2785_v0, %v2799_v1  ;;  %v839_v6 = vpop.f32.mrb[3].mxu0  ;;  %v976_v8 = vpop.f32.mrb[3].mxu1  ;;  %v1777_v62 = vld [vmem:[%s3473_s23 + $0x8] sm:$0xff]  ;;  %v1779_v1 = vld [vmem:[%s3473_s23 + $0x18] sm:$0xff] }
 0x119   : > { %v1021_v9 = vsub.f32 0.0, %v1013_v63  ;;  %v1007_v11 = vsub.f32 %v839_v6, %v976_v8  ;;  %3058 = vmatprep.subr.bf16.mxu1 %v3057_v60  ;;  %v1778_v63 = vld [vmem:[%s3473_s23 + $0x10] sm:$0xff]  ;;  %v3069_v0 = vpack.c.bf16 %v1777_v62, %v1776_v61  ;;  %v1781_v6 = vld [vmem:[%s3473_s23 + $0x28] sm:$0xff]  ;;  %v1874_v61 = vld [vmem:[%s3482_s8] sm:$0xff] }
 0x11a   : > { %v1031_v13 = vmul.f32 1.442695, %v1022_v4  ;;  %v1016_v14 = vand.u32 2147483647, %v1008_v5  ;;  %3060 = vmatpush3.bf16.msra.mxu1 %v3057_v60  ;;  %v3073_v4 = vpack.c.bf16 %v1779_v1, %v1778_v63  ;;  %v1780_v5 = vld [vmem:[%s3473_s23 + $0x20] sm:$0xff]  ;;  %v1875_v62 = vld [vmem:[%s3482_s8 + $0x8] sm:$0xff] }
 0x11b   : > { %v1029_v15 = vmul.f32 1.442695, %v1021_v9  ;;  %v1015_v16 = vand.u32 2147483647, %v1007_v11  ;;  %v2788_v18 = vpop.f32.mrb[4].mxu0  ;;  %v2802_v19 = vpop.f32.mrb[4].mxu1  ;;  %3070 = vmatprep.subr.bf16.mxu0 %v3069_v0  ;;  %v3077_v8 = vpack.c.bf16 %v1781_v6, %v1780_v5  ;;  %v3101_v63 = vpack.c.bf16 %v1875_v62, %v1874_v61 }
 0x11c   : > { %v1024_v20 = vsub.f32 0.0, %v1016_v14  ;;  %v1010_v22 = vsub.f32 %v2788_v18, %v2802_v19  ;;  %v849_v23 = vpop.f32.mrb[5].mxu0  ;;  %v986_v24 = vpop.f32.mrb[5].mxu1  ;;  %v1352_v9 = vld [vmem:[%s3468_s18] sm:$0xff]  ;;  %v1353_v11 = vld [vmem:[%s3468_s18 + $0x8] sm:$0xff]  ;;  %v1783_v14 = vld [vmem:[%s3473_s23 + $0x38] sm:$0xff] }
 0x11d   : > { %3206 = vpow2.f32 %v1029_v15  ;;  %v1023_v25 = vsub.f32 0.0, %v1015_v16  ;;  %v1009_v27 = vsub.f32 %v849_v23, %v986_v24  ;;  %v3061_v15 = vpack.c.bf16 %v1353_v11, %v1352_v9  ;;  %v1784_v18 = vld [vmem:[%s3473_s23 + $0x40] sm:$0xff]  ;;  %v1785_v19 = vld [vmem:[%s3473_s23 + $0x48] sm:$0xff]  ;;  %v1787_v23 = vld [vmem:[%s3473_s23 + $0x58] sm:$0xff] }
 0x11e   : > { %3208 = vpow2.f32 %v1031_v13  ;;  %v1035_v29 = vmul.f32 1.442695, %v1024_v20  ;;  %v1018_v30 = vand.u32 2147483647, %v1010_v22  ;;  %v1782_v13 = vld [vmem:[%s3473_s23 + $0x30] sm:$0xff]  ;;  %v3085_v20 = vpack.c.bf16 %v1785_v19, %v1784_v18  ;;  %v1877_v19 = vld [vmem:[%s3482_s8 + $0x18] sm:$0xff] }
 0x11f   : > { %v1033_v32 = vmul.f32 1.442695, %v1023_v25  ;;  %v1017_v33 = vand.u32 2147483647, %v1009_v27  ;;  %v2791_v34 = vpop.f32.mrb[6].mxu0  ;;  %v2805_v35 = vpop.f32.mrb[6].mxu1  ;;  %3062 = vmatprep.subr.bf16.mxu1 %v3061_v15  ;;  %v3081_v16 = vpack.c.bf16 %v1783_v14, %v1782_v13 }
 0x120   : > { %3210 = vpow2.f32 %v1035_v29  ;;  %v1026_v36 = vsub.f32 0.0, %v1018_v30  ;;  %v1012_v37 = vsub.f32 %v2791_v34, %v2805_v35  ;;  %v859_v38 = vpop.f32.mrb[7].mxu0  ;;  %v996_v39 = vpop.f32.mrb[7].mxu1  ;;  %v1786_v22 = vld [vmem:[%s3473_s23 + $0x50] sm:$0xff]  ;;  %v1788_v25 = vld [vmem:[%s3473_s23 + $0x60] sm:$0xff]  ;;  %v1789_v27 = vld [vmem:[%s3473_s23 + $0x68] sm:$0xff] }
 0x121   : > { %3212 = vpow2.f32 %v1033_v32  ;;  %v1025_v40 = vsub.f32 0.0, %v1017_v33  ;;  %v1011_v41 = vsub.f32 %v859_v38, %v996_v39  ;;  %v3089_v24 = vpack.c.bf16 %v1787_v23, %v1786_v22  ;;  %v1790_v30 = vld [vmem:[%s3473_s23 + $0x70] sm:$0xff]  ;;  %v1791_v32 = vld [vmem:[%s3473_s23 + $0x78] sm:$0xff] }
 0x122   : > { %v1039_v42 = vmul.f32 1.442695, %v1026_v36  ;;  %v1020_v43 = vand.u32 2147483647, %v1012_v37  ;;  %v3093_v29 = vpack.c.bf16 %v1789_v27, %v1788_v25  ;;  %v3097_v33 = vpack.c.bf16 %v1791_v32, %v1790_v30  ;;  %v1354_v37 = vld [vmem:[%s3468_s18 + $0x10] sm:$0xff]  ;;  %v1355_v38 = vld [vmem:[%s3468_s18 + $0x18] sm:$0xff] }
 0x123   : > { %v1037_v44 = vmul.f32 1.442695, %v1025_v40  ;;  %v1019_v45 = vand.u32 2147483647, %v1011_v41  ;;  %v1876_v18 = vld [vmem:[%s3482_s8 + $0x10] sm:$0xff]  ;;  %v1878_v30 = vld [vmem:[%s3482_s8 + $0x20] sm:$0xff] }
 0x124   : > { %3214 = vpow2.f32 %v1039_v42  ;;  %v1028_v46 = vsub.f32 0.0, %v1020_v43  ;;  %v3065_v42 = vpack.c.bf16 %v1355_v38, %v1354_v37  ;;  %v1879_v32 = vld [vmem:[%s3482_s8 + $0x28] sm:$0xff]  ;;  %v1888_v61 = vld [vmem:[%s3482_s8 + $0x70] sm:$0xff]  ;;  %v1889_v62 = vld [vmem:[%s3482_s8 + $0x78] sm:$0xff]  ;;  %s2410_s18 = sshll.u32 %s3319_s27, 4  ;;  %s2411_s18 = int_to_ptr.vmem [resolvable:$true] %s2410_s18 }
 0x125   : > { %3216 = vpow2.f32 %v1037_v44  ;;  %v1027_v47 = vsub.f32 0.0, %v1019_v45  ;;  %s3273_s25 = scalar_lea.vmem %s2411_s18, 16  ;;  %s3279_s23 = scalar_lea.vmem %s2411_s18, 32 }
 0x126   : > { %v1043_v48 = vmul.f32 1.442695, %v1028_v46  ;;  %p3274_p3 = scmp.ne.s32.totalorder %s2411_s18, %s3273_s25  ;;  %p3280_p6 = scmp.lt.s32.totalorder %s2411_s18, %s2411_s18 }
 0x127   : > { %v3207_v49 = vpop.eup %3206  ;;  %v1041_v50 = vmul.f32 1.442695, %v1027_v47  ;;  %p3281_p7 = scmp.lt.s32.totalorder %s3279_s23, %s3273_s25 }
 0x128   : > { %v3209_v51 = vpop.eup %3208  ;;  %3218 = vpow2.f32 %v1043_v48  ;;  %2838 = vmatprep.mubr.f32.mxu0 %v3207_v49  ;;  %p3275_p4 = pnand %p3274_p3, %p3189_p2 }
 0x129   : > { %3220 = vpow2.f32 %v1041_v50  ;;  %2839 = vmatmul.mubr.f32.vlgmr.msra.gmra.mrb[8].mxu0 %v3209_v51  ;;  %p3282_p8 = por %p3281_p7, %p3280_p6 }
 0x12a   : > { %v3211_v52 = vpop.eup %3210  ;;  %3072 = vmatpush3.bf16.msra.mxu0 %v3069_v0  ;;  %v2618_v0 = vld [vmem:[%s700_s2] ss:$0 sm:$0xff]  ;;  %s4095_s2 = sld [smem:[#allocation11_spill]]  ;;  %p3276_p5 = pneg %p3275_p4 }
 0x12b   : > { %v3213_v53 = vpop.eup %3212  ;;  %3074 = vmatprep.subr.bf16.mxu0 %v3073_v4 }
 0x12c   : > { %2841 = vmatprep.mubr.f32.mxu0 %v3213_v53  ;;  %p3283_p9 = pnand %p3282_p8, %p3276_p5 }
 0x12d   : > { %2842 = vmatmul.mubr.f32.gmra.mrb[10].mxu0 %v3211_v52 }
 0x12e   : > { %v3215_v54 = vpop.eup %3214  ;;  %3076 = vmatpush3.bf16.msra.mxu0 %v3073_v4 }
 0x12f   : > { %v3217_v55 = vpop.eup %3216  ;;  %3078 = vmatprep.subr.bf16.mxu0 %v3077_v8 }
 0x130   : > { %2844 = vmatprep.mubr.f32.mxu0 %v3217_v55 }
 0x131   : > { %2845 = vmatmul.mubr.f32.gmra.mrb[12].mxu0 %v3215_v54 }
 0x132   : > { %v3219_v56 = vpop.eup %3218  ;;  %3080 = vmatpush3.bf16.msra.mxu0 %v3077_v8 }
 0x133   : > { %v3221_v57 = vpop.eup %3220  ;;  %3082 = vmatprep.subr.bf16.mxu0 %v3081_v16 }
 0x134   : > { %2847 = vmatprep.mubr.f32.mxu0 %v3221_v57 }
 0x135   : > { %2848 = vmatmul.mubr.f32.gmra.mrb[14].mxu0 %v3219_v56 }
 0x136   : > { %2930 = vmatprep.mubr.f32.mxu0 %v3511_v2  ;;  %3084 = vmatpush3.bf16.msra.mxu0 %v3081_v16 }
 0x137   : > { %3086 = vmatprep.subr.bf16.mxu0 %v3085_v20 }
 0x13a   : > { %3088 = vmatpush3.bf16.msra.mxu0 %v3085_v20 }
 0x13b   : > { %3090 = vmatprep.subr.bf16.mxu0 %v3089_v24 }
 0x13e   : > { %3092 = vmatpush3.bf16.msra.mxu0 %v3089_v24  ;;  %v3105_v24 = vpack.c.bf16 %v1877_v19, %v1876_v18 }
 0x13f   : > { %3094 = vmatprep.subr.bf16.mxu0 %v3093_v29 }
 0x142   : > { %3096 = vmatpush3.bf16.msra.mxu0 %v3093_v29 }
 0x143   : > { %3098 = vmatprep.subr.bf16.mxu0 %v3097_v33 }
 0x146   : > { %3100 = vmatpush3.bf16.msra.mxu0 %v3097_v33 }
 0x149   : > { %2931 = vmatmul.mubr.f32.vlgmr.msra.gmra.mrb[16].mxu0 %v3516_v3 }
 0x1fc   : > { %v2840_v34 = vpop.f32.mrb[8].mxu0 }
 0x1fd   : > { %v1175_v35 = vmul.f32 0.01, %v2840_v34  ;;  %v1127_v36 = vpop.f32.mrb[9].mxu0  ;;  %vm1167_vm2 = vcmp.gt.f32.partialorder %v2840_v34, 0.0 }
 0x1fe   : > { %vm1166_vm3 = vcmp.gt.f32.partialorder %v1127_v36, 0.0  ;;  %v1174_v39 = vmul.f32 0.01, %v1127_v36 }
 0x1ff   : > { %v1183_v43 = vsel %vm1167_vm2, %v2840_v34, %v1175_v35  ;;  %vm1356_vm2 = vcmask 261120  }
 0x200   : > { %v2843_v40 = vpop.f32.mrb[10].mxu0  ;;  %v1182_v41 = vsel %vm1166_vm3, %v1127_v36, %v1174_v39  ;;  %v3109_v36 = vpack.c.bf16 %v1879_v32, %v1878_v30 }
 0x201   : > { %v1177_v44 = vmul.f32 0.01, %v2843_v40  ;;  %v1137_v45 = vpop.f32.mrb[11].mxu0  ;;  %2866 = vmatprep.mubr.msk.f32.mxu1 %vm1198_vm4, %v1182_v41  ;;  %vm1169_vm5 = vcmp.gt.f32.partialorder %v2843_v40, 0.0  ;;  %v1881_v41 = vld [vmem:[%s3482_s8 + $0x38] sm:$0xff] }
 0x202   : > { %vm1168_vm6 = vcmp.gt.f32.partialorder %v1137_v45, 0.0  ;;  %v1176_v46 = vmul.f32 0.01, %v1137_v45  ;;  %2867 = vmatmul.mubr.msk.f32.vlgmr.msra.gmra.mrb[8].mxu1 %vm1198_vm4, %v1183_v43 }
 0x203   : > { %3064 = vmatpush3.bf16.msra.mxu1 %v3061_v15  ;;  %v1185_v51 = vsel %vm1169_vm5, %v2843_v40, %v1177_v44  ;;  %v1880_v40 = vld [vmem:[%s3482_s8 + $0x30] sm:$0xff] }
 0x204   : > { %v2846_v47 = vpop.f32.mrb[12].mxu0  ;;  %v1184_v48 = vsel %vm1168_vm6, %v1137_v45, %v1176_v46  ;;  %3066 = vmatprep.subr.bf16.mxu1 %v3065_v42  ;;  %v3113_v45 = vpack.c.bf16 %v1881_v41, %v1880_v40 }
 0x205   : > { %v1179_v49 = vmul.f32 0.01, %v2846_v47  ;;  %v1147_v50 = vpop.f32.mrb[13].mxu0  ;;  %2869 = vmatprep.mubr.msk.f32.mxu1 %vm1198_vm4, %v1184_v48  ;;  %vm1171_vm7 = vcmp.gt.f32.partialorder %v2846_v47, 0.0 }
 0x206   : > { %vm1170_vm8 = vcmp.gt.f32.partialorder %v1147_v50, 0.0  ;;  %v1178_v52 = vmul.f32 0.01, %v1147_v50  ;;  %2870 = vmatmul.mubr.msk.f32.gmra.mrb[10].mxu1 %vm1198_vm4, %v1185_v51 }
 0x207   : > { %3068 = vmatpush3.bf16.msra.mxu1 %v3065_v42  ;;  %v1187_v57 = vsel %vm1171_vm7, %v2846_v47, %v1179_v49  ;;  %v1882_v49 = vld [vmem:[%s3482_s8 + $0x40] sm:$0xff] }
 0x208   : > { %v2849_v53 = vpop.f32.mrb[14].mxu0  ;;  %v1186_v54 = vsel %vm1170_vm8, %v1147_v50, %v1178_v52  ;;  %3102 = vmatprep.subr.bf16.mxu1 %v3101_v63  ;;  %v1883_v50 = vld [vmem:[%s3482_s8 + $0x48] sm:$0xff] }
 0x209   : > { %v1181_v55 = vmul.f32 0.01, %v2849_v53  ;;  %v1157_v56 = vpop.f32.mrb[15].mxu0  ;;  %2872 = vmatprep.mubr.msk.f32.mxu1 %vm1198_vm4, %v1186_v54  ;;  %vm1173_vm9 = vcmp.gt.f32.partialorder %v2849_v53, 0.0 }
 0x20a   : > { %vm1172_vm10 = vcmp.gt.f32.partialorder %v1157_v56, 0.0  ;;  %v1180_v58 = vmul.f32 0.01, %v1157_v56  ;;  %2873 = vmatmul.mubr.msk.f32.gmra.mrb[12].mxu1 %vm1198_vm4, %v1187_v57 }
 0x20b   : > { %v1189_v60 = vsel %vm1173_vm9, %v2849_v53, %v1181_v55  ;;  %v3117_v53 = vpack.c.bf16 %v1883_v50, %v1882_v49  ;;  %v1884_v55 = vld [vmem:[%s3482_s8 + $0x50] sm:$0xff] }
 0x20c   : > { %v1188_v59 = vsel %vm1172_vm10, %v1157_v56, %v1180_v58  ;;  %v1885_v56 = vld [vmem:[%s3482_s8 + $0x58] sm:$0xff]  ;;  %v1886_v58 = vld [vmem:[%s3482_s8 + $0x60] sm:$0xff]  ;;  %vm1984_vm10 = vcmask 1043456  }
 0x20d   : > { %2875 = vmatprep.mubr.msk.f32.mxu1 %vm1198_vm4, %v1188_v59  ;;  %v3121_v57 = vpack.c.bf16 %v1885_v56, %v1884_v55  ;;  %v1887_v59 = vld [vmem:[%s3482_s8 + $0x68] sm:$0xff] }
 0x20e   : > { %2876 = vmatmul.mubr.msk.f32.gmra.mrb[14].mxu1 %vm1198_vm4, %v1189_v60  ;;  %v3125_v60 = vpack.c.bf16 %v1887_v59, %v1886_v58  ;;  %v1974_v56 = vld [vmem:[%s4097_s29 + $0x8] sm:$0x3]  ;;  %v2149_v58 = vld [vmem:[%s4098_s0] sm:$0xff] }
 0x20f   : > { %v2357_v59 = vld [vmem:[%s4099_s30 + $0x8] sm:$0x3] }
 0x21c   : > { %v2932_v1 = vpop.f32.mrb[16].mxu0 }
 0x21d   : > { %v1871_v4 = vadd.f32 %v2932_v1, %v2618_v0  ;;  %v1865_v5 = vpop.f32.mrb[17].mxu0  ;;  %v1976_v1 = vld [vmem:[%s4095_s2 + $0x8] sm:$0x3] }
 0x21e   : > { %v1866_v6 = vadd.f32 %v2618_v0, %v1865_v5  ;;  %v3697_v0 = vld [vmem:[%s3492_s3] sm:$0xf] }
 0x21f   : > { %v2157_v8 = vrot.slane %v1871_v4, 2 }
 0x220   : > { %v3133_v9 = vpack.c.bf16 %v1871_v4, %v1866_v6  ;;  %v2156_v11 = vrot.slane %v1866_v6, 2 }
 0x222   : > { %3135 = vmatprep.subr.msk.bf16.mxu0 %vm3134_vm13, %v3133_v9  ;;  %v3671_v13 = vsel %vm733_vm0, %v2156_v11, %v2157_v8 }
 0x223   : > { %3138 = vmatpush3.bf16.msk.msra.mxu0 %vm3134_vm13, %v3133_v9 }
 0x2d5   : > { %v2868_v14 = vpop.f32.mrb[8].mxu1 }
 0x2d6   : > { %v1337_v15 = vmul.f32 0.01, %v2868_v14  ;;  %v1289_v16 = vpop.f32.mrb[9].mxu1  ;;  %vm1329_vm14 = vcmp.gt.f32.partialorder %v2868_v14, 0.0 }
 0x2d7   : > { %vm1328_vm15 = vcmp.gt.f32.partialorder %v1289_v16, 0.0  ;;  %v1336_v20 = vmul.f32 0.01, %v1289_v16 }
 0x2d8   : > { %v1345_v25 = vsel %vm1329_vm14, %v2868_v14, %v1337_v15 }
 0x2d9   : > { %v2871_v22 = vpop.f32.mrb[10].mxu1  ;;  %v1344_v23 = vsel %vm1328_vm15, %v1289_v16, %v1336_v20 }
 0x2da   : > { %v1339_v27 = vmul.f32 0.01, %v2871_v22  ;;  %v1299_v29 = vpop.f32.mrb[11].mxu1  ;;  %2886 = vmatprep.mubr.msk.f32.mxu1 %vm1356_vm2, %v1344_v23  ;;  %vm1331_vm3 = vcmp.gt.f32.partialorder %v2871_v22, 0.0 }
 0x2db   : > { %vm1330_vm5 = vcmp.gt.f32.partialorder %v1299_v29, 0.0  ;;  %v1338_v33 = vmul.f32 0.01, %v1299_v29  ;;  %2887 = vmatmul.mubr.msk.f32.vlgmr.msra.gmra.mrb[16].mxu1 %vm1356_vm2, %v1345_v25 }
 0x2dc   : > { %3104 = vmatpush3.bf16.msra.mxu1 %v3101_v63  ;;  %v1347_v39 = vsel %vm1331_vm3, %v2871_v22, %v1339_v27  ;;  %v3129_v63 = vpack.c.bf16 %v1889_v62, %v1888_v61  ;;  %v3317_v61 = vmov 0   ;;  %v1559_v62 = vlaneseq }
 0x2dd   : > { %v2874_v34 = vpop.f32.mrb[12].mxu1  ;;  %v1346_v35 = vsel %vm1330_vm5, %v1299_v29, %v1338_v33  ;;  %3106 = vmatprep.subr.bf16.mxu1 %v3105_v24  ;;  %3205 = vset.pattern.permute.xlu1 %v3317_v61 }
 0x2de   : > { %v1341_v37 = vmul.f32 0.01, %v2874_v34  ;;  %v1309_v38 = vpop.f32.mrb[13].mxu1  ;;  %2889 = vmatprep.mubr.msk.f32.mxu1 %vm1356_vm2, %v1346_v35  ;;  %vm1333_vm6 = vcmp.gt.f32.partialorder %v2874_v34, 0.0  ;;  %3204 = vset.pattern.permute.xlu0 %v3317_v61 }
 0x2df   : > { %vm1332_vm7 = vcmp.gt.f32.partialorder %v1309_v38, 0.0  ;;  %v1340_v42 = vmul.f32 0.01, %v1309_v38  ;;  %2890 = vmatmul.mubr.msk.f32.gmra.mrb[18].mxu1 %vm1356_vm2, %v1347_v39 }
 0x2e0   : > { %3108 = vmatpush3.bf16.msra.mxu1 %v3105_v24  ;;  %v1349_v48 = vsel %vm1333_vm6, %v2874_v34, %v1341_v37 }
 0x2e1   : > { %v2877_v43 = vpop.f32.mrb[14].mxu1  ;;  %v1348_v44 = vsel %vm1332_vm7, %v1309_v38, %v1340_v42  ;;  %3110 = vmatprep.subr.bf16.mxu1 %v3109_v36 }
 0x2e2   : > { %v1343_v46 = vmul.f32 0.01, %v2877_v43  ;;  %v1319_v47 = vpop.f32.mrb[15].mxu1  ;;  %2892 = vmatprep.mubr.msk.f32.mxu1 %vm1356_vm2, %v1348_v44  ;;  %vm1335_vm8 = vcmp.gt.f32.partialorder %v2877_v43, 0.0 }
 0x2e3   : > { %vm1334_vm9 = vcmp.gt.f32.partialorder %v1319_v47, 0.0  ;;  %v1342_v51 = vmul.f32 0.01, %v1319_v47  ;;  %2893 = vmatmul.mubr.msk.f32.gmra.mrb[20].mxu1 %vm1356_vm2, %v1349_v48 }
 0x2e4   : > { %3112 = vmatpush3.bf16.msra.mxu1 %v3109_v36  ;;  %v1351_v54 = vsel %vm1335_vm8, %v2877_v43, %v1343_v46 }
 0x2e5   : > { %v1350_v52 = vsel %vm1334_vm9, %v1319_v47, %v1342_v51  ;;  %3114 = vmatprep.subr.bf16.mxu1 %v3113_v45 }
 0x2e6   : > { %2895 = vmatprep.mubr.msk.f32.mxu1 %vm1356_vm2, %v1350_v52 }
 0x2e7   : > { %2896 = vmatmul.mubr.msk.f32.gmra.mrb[22].mxu1 %vm1356_vm2, %v1351_v54  ;;  %v1973_v54 = vld [vmem:[%s4097_s29] sm:$0xff] }
 0x2e8   : > { %3116 = vmatpush3.bf16.msra.mxu1 %v3113_v45  ;;  %2965 = vmatprep.mubr.f32.mxu1 %v3511_v2  ;;  %v1975_v2 = vld [vmem:[%s4095_s2] sm:$0xff] }
 0x2e9   : > { %3118 = vmatprep.subr.bf16.mxu1 %v3117_v53 }
 0x2ec   : > { %3120 = vmatpush3.bf16.msra.mxu1 %v3117_v53 }
 0x2ed   : > { %3122 = vmatprep.subr.bf16.mxu1 %v3121_v57 }
 0x2f0   : > { %3124 = vmatpush3.bf16.msra.mxu1 %v3121_v57 }
 0x2f1   : > { %3126 = vmatprep.subr.bf16.mxu1 %v3125_v60 }
 0x2f4   : > { %3128 = vmatpush3.bf16.msra.mxu1 %v3125_v60  ;;  %v2356_v60 = vld [vmem:[%s4099_s30] sm:$0xff] }
 0x2f5   : > { %3130 = vmatprep.subr.bf16.mxu1 %v3129_v63 }
 0x2f8   : > { %3132 = vmatpush3.bf16.msra.mxu1 %v3129_v63  ;;  %v3779_v63 = vshrl.u32 %v1559_v62, 7 }
 0x2f9   : > { %2968 = vmatprep.subr.msk.mxu1 %vm1984_vm10, %v3697_v0 }
 0x2fa   : > { %v2153_v61 = vsub.s32 0, %v3779_v63 }
 0x2fb   : > { %2966 = vmatmul.mubr.f32.vlgmr.msra.gmra.mrb[24].mxu1 %v3516_v3 }
 0x2fc   : > { %2969 = vmatpush3.msk.msra.mxu1 %vm1984_vm10, %v3697_v0  ;;  %2970 = vmatprep.mubr.msk.f32.mxu1 %vm1977_vm11, %v1975_v2 }
 0x2fd   : > { %2980 = vmatprep.subr.mxu1 %v3671_v13 }
 0x2ff   : > { %2971 = vmatmul.mubr.msk.f32.vlgmr.msra.gmra.mrb[26].mxu1 %vm1977_vm11, %v1976_v1  ;;  %v3783_v2 = vmul.u32.u64.low 3817748708, %v3779_v63  ;;  %v3784_v1 = vmul.u32.u64.high 3817748708, %v3779_v63, %v3783_v2 }
 0x300   : > { %2981 = vmatpush3.msra.mxu1 %v3671_v13  ;;  %2982 = vmatprep.mubr.msk.f32.mxu1 %vm738_vm1, %v3527_v7 }
 0x303   : > { %2983 = vmatmul.mubr.msk.f32.vlgmr.msra.gmra.mrb[28].mxu1 %vm738_vm1, %v3538_v10 }
 0x304   : > { %2985 = vmatprep.mubr.msk.f32.mxu1 %vm738_vm1, %v3546_v12 }
 0x307   : > { %2986 = vmatmul.mubr.msk.f32.gmra.mrb[30].mxu1 %vm738_vm1, %v3563_v17  ;;  %v2601_v17 = vld [vmem:[%s4096_s26] ss:$0 sm:$0xff] }
 0x308   : > { %2988 = vmatprep.mubr.msk.f32.mxu1 %vm738_vm1, %v3572_v21 }
 0x30b   : > { %2989 = vmatmul.mubr.msk.f32.gmra.mrb[32].mxu1 %vm738_vm1, %v3588_v26 }
 0x30c   : > { %2991 = vmatprep.mubr.msk.f32.mxu1 %vm738_vm1, %v3596_v28 }
 0x30f   : > { %2992 = vmatmul.mubr.msk.f32.gmra.mrb[34].mxu1 %vm738_vm1, %v3610_v31 }
 0x3ae   : > { %v2888_v3 = vpop.f32.mrb[16].mxu1 }
 0x3af   : > { %vm1487_vm12 = vcmp.gt.f32.partialorder %v2888_v3, 0.0  ;;  %v1495_v7 = vmul.f32 0.01, %v2888_v3  ;;  %v1447_v10 = vpop.f32.mrb[17].mxu1 }
 0x3b0   : > { %vm1486_vm13 = vcmp.gt.f32.partialorder %v1447_v10, 0.0  ;;  %v1494_v12 = vmul.f32 0.01, %v1447_v10 }
 0x3b1   : > { %v1503_v26 = vsel %vm1487_vm12, %v2888_v3, %v1495_v7  ;;  %v1563_v3 = vadd.s32 24, %v3779_v63  ;;  %v1561_v7 = vadd.s32 8, %v3779_v63 }
 0x3b2   : > { %v2891_v21 = vpop.f32.mrb[18].mxu1  ;;  %v1502_v4 = vsel %vm1486_vm13, %v1447_v10, %v1494_v12  ;;  %v1518_v11 = vmul.f32 %v2601_v17, %v1503_v26  ;;  %v3797_v26 = vstv %s1549_s6 }
 0x3b3   : > { %vm1489_vm14 = vcmp.gt.f32.partialorder %v2891_v21, 0.0  ;;  %v1497_v5 = vmul.f32 0.01, %v2891_v21  ;;  %v1457_v28 = vpop.f32.mrb[19].mxu1  ;;  %v1517_v6 = vmul.f32 %v2601_v17, %v1502_v4  ;;  %v3795_v4 = vadd.s32 16, %v3779_v63 }
 0x3b4   : > { %vm1488_vm15 = vcmp.gt.f32.partialorder %v1457_v28, 0.0  ;;  %v1496_v31 = vmul.f32 0.01, %v1457_v28  ;;  %v1528_v23 = vsel %vm1356_vm2, %v1518_v11, 0.0 }
 0x3b5   : > { %v1525_v8 = vsel %vm1356_vm2, %v1517_v6, 0.0  ;;  %v1505_v9 = vsel %vm1489_vm14, %v2891_v21, %v1497_v5  ;;  %v3788_v10 = vmul.u32.u64.low 3817748708, %v1563_v3  ;;  %v3789_v12 = vmul.u32.u64.high 3817748708, %v1563_v3, %v3788_v10 }
 0x3b6   : > { %1526 = vadd.xlane.f32.xlu0 %v1525_v8  ;;  %v2894_v13 = vpop.f32.mrb[20].mxu1  ;;  %v1520_v14 = vmul.f32 %v2601_v17, %v1505_v9  ;;  %v1504_v15 = vsel %vm1488_vm15, %v1457_v28, %v1496_v31  ;;  %v1574_v5 = vshrl.u32 %v3784_v1, 3  ;;  %v3801_v28 = vadd.s32 32, %v3779_v63 }
 0x3b7   : > { %vm1491_vm1 = vcmp.gt.f32.partialorder %v2894_v13, 0.0  ;;  %v1499_v16 = vmul.f32 0.01, %v2894_v13  ;;  %v1467_v18 = vpop.f32.mrb[21].mxu1  ;;  %v1519_v22 = vmul.f32 %v2601_v17, %v1504_v15  ;;  %v3808_v9 = vadd.s32 40, %v3779_v63 }
 0x3b8   : > { %vm1490_vm3 = vcmp.gt.f32.partialorder %v1467_v18, 0.0  ;;  %v1498_v19 = vmul.f32 0.01, %v1467_v18  ;;  %v1534_v20 = vsel %vm1356_vm2, %v1520_v14, 0.0  ;;  %v1607_v14 = vshrl.u32 %v3789_v12, 3 }
 0x3b9   : > { %1535 = vadd.xlane.f32.xlu1 %v1534_v20  ;;  %v1507_v24 = vsel %vm1491_vm1, %v2894_v13, %v1499_v16  ;;  %v1531_v34 = vsel %vm1356_vm2, %v1519_v22, 0.0  ;;  %v3804_v31 = vmul.u32.u64.low 3817748708, %v3795_v4  ;;  %v3805_v8 = vmul.u32.u64.high 3817748708, %v3795_v4, %v3804_v31 }
 0x3ba   : > { %1529 = vadd.xlane.f32.xlu0 %v1528_v23  ;;  %v2897_v25 = vpop.f32.mrb[22].mxu1  ;;  %v1506_v27 = vsel %vm1490_vm3, %v1467_v18, %v1498_v19  ;;  %v1522_v35 = vmul.f32 %v2601_v17, %v1507_v24  ;;  %v1575_v13 = vmul.u32 9, %v1574_v5  ;;  %v3818_v22 = vadd.s32 48, %v3779_v63 }
 0x3bb   : > { %vm1493_vm5 = vcmp.gt.f32.partialorder %v2897_v25, 0.0  ;;  %v1501_v29 = vmul.f32 0.01, %v2897_v25  ;;  %v1477_v30 = vpop.f32.mrb[23].mxu1  ;;  %v1521_v32 = vmul.f32 %v2601_v17, %v1506_v27 }
 0x3bc   : > { %vm1492_vm6 = vcmp.gt.f32.partialorder %v1477_v30, 0.0  ;;  %v1500_v33 = vmul.f32 0.01, %v1477_v30  ;;  %v1540_v40 = vsel %vm1356_vm2, %v1522_v35, 0.0 }
 0x3bd   : > { %1532 = vadd.xlane.f32.xlu1 %v1531_v34  ;;  %v1537_v36 = vsel %vm1356_vm2, %v1521_v32, 0.0  ;;  %v1509_v37 = vsel %vm1493_vm5, %v2897_v25, %v1501_v29  ;;  %v3813_v15 = vmul.u32.u64.low 3817748708, %v3801_v28  ;;  %v3814_v16 = vmul.u32.u64.high 3817748708, %v3801_v28, %v3813_v15 }
 0x3be   : > { %1538 = vadd.xlane.f32.xlu0 %v1537_v36  ;;  %v1508_v38 = vsel %vm1492_vm6, %v1477_v30, %v1500_v33  ;;  %v1524_v41 = vmul.f32 %v2601_v17, %v1509_v37  ;;  %v3822_v25 = vmul.u32.u64.low 3817748708, %v3808_v9  ;;  %v3823_v27 = vmul.u32.u64.high 3817748708, %v3808_v9, %v3822_v25 }
 0x3bf   : > { %v1523_v39 = vmul.f32 %v2601_v17, %v1508_v38  ;;  %v3791_v17 = vmul.u32.u64.low 3817748708, %v1561_v7  ;;  %v3792_v21 = vmul.u32.u64.high 3817748708, %v1561_v7, %v3791_v17  ;;  %v3827_v30 = vadd.s32 56, %v3779_v63 }
 0x3c0   : > { %v1546_v43 = vsel %vm1356_vm2, %v1524_v41, 0.0  ;;  %v3830_v33 = vsub.s32 %v3779_v63, %v1575_v13  ;;  %v1608_v34 = vmul.u32 9, %v1607_v14  ;;  %v1629_v5 = vshrl.u32 %v3823_v27, 3 }
 0x3c1   : > { %1541 = vadd.xlane.f32.xlu1 %v1540_v40  ;;  %v1543_v42 = vsel %vm1356_vm2, %v1523_v39, 0.0  ;;  %vm2063_vm2 = vcmask 80896   ;;  %v1585_v20 = vshrl.u32 %v3792_v21, 3 }
 0x3c2   : > { %1544 = vadd.xlane.f32.xlu0 %v1543_v42  ;;  %2977 = vmatprep.mubr.msk.f32.mxu0 %vm2063_vm2, %v1973_v54  ;;  %v3833_v38 = vmul.u32.u64.low 3817748708, %v3818_v22  ;;  %v3834_v39 = vmul.u32.u64.high 3817748708, %v3818_v22, %v3833_v38  ;;  %v1596_v42 = vshrl.u32 %v3805_v8, 3  ;;  %vm1656_vm7 = vcmp.ne.s32.totalorder %v3830_v33, 0 }
 0x3c3   : > { %2978 = vmatmul.mubr.msk.f32.vlgmr.msra.gmra.mrb[18].mxu0 %vm2063_vm2, %v1974_v56  ;;  %v1586_v37 = vmul.u32 9, %v1585_v20  ;;  %v3840_v54 = vmul.u32.u64.low 3817748708, %v3827_v30  ;;  %v3841_v56 = vmul.u32.u64.high 3817748708, %v3827_v30, %v3840_v54  ;;  %vm1664_vm8 = vcmp.lt.s32.totalorder %v3830_v33, 0 }
 0x3c4   : > { %3010 = vmatprep.mubr.msk.f32.mxu0 %vm1198_vm4, %v2149_v58  ;;  %v1597_v17 = vmul.u32 9, %v1596_v42  ;;  %v1680_v21 = vadd.s32 9, %v3830_v33  ;;  %v1640_v13 = vshrl.u32 %v3834_v39, 3  ;;  %vm3865_vm13 = vmand %vm1664_vm8, %vm1656_vm7  ;;  %v1630_v20 = vmul.u32 9, %v1629_v5 }
 0x3c5   : > { %1547 = vadd.xlane.f32.xlu1 %v1546_v43  ;;  %v3847_v1 = vsub.s32 %v1561_v7, %v1586_v37 }
 0x3c7   : > { %vm1657_vm11 = vcmp.ne.s32.totalorder %v3847_v1, 0  ;;  %vm1665_vm12 = vcmp.lt.s32.totalorder %v3847_v1, 0 }
 0x3c8   : > { %vm3876_vm14 = vmand %vm1665_vm12, %vm1657_vm11 }
 0x3ce   : > { %v3739_v44 = vpop.f32.mrb[24].mxu1 }
 0x3cf   : > { %v3741_v45 = vpop.f32.mrb[25].mxu1 }
 0x3d2   : > { %v3743_v46 = vpop.f32.mrb[26].mxu1 }
 0x3d3   : > { %v3745_v47 = vpop.f32.mrb[27].mxu1 }
 0x3d6   : > { %v3747_v48 = vpop.f32.mrb[28].mxu1  ;;  %2365 = vperm.xlu1 %3205, %v2357_v59   ;;  %v3843_v59 = vsub.s32 %v1563_v3, %v1608_v34 }
 0x3d7   : > { %v3749_v49 = vpop.f32.mrb[29].mxu1 }
 0x3d8   : > { %2360 = vperm.xlu0 %3204, %v2356_v60   ;;  %v1618_v60 = vshrl.u32 %v3814_v16, 3  ;;  %vm1659_vm9 = vcmp.ne.s32.totalorder %v3843_v59, 0  ;;  %vm1667_vm10 = vcmp.lt.s32.totalorder %v3843_v59, 0  ;;  %v1683_v34 = vadd.s32 9, %v3843_v59 }
 0x3d9   : > { %vm3891_vm15 = vmand %vm1667_vm10, %vm1659_vm9 }
 0x3da   : > { %v3751_v50 = vpop.f32.mrb[30].mxu1  ;;  %v1619_v7 = vmul.u32 9, %v1618_v60 }
 0x3db   : > { %v3753_v51 = vpop.f32.mrb[31].mxu1 }
 0x3dc   : > { %v3881_v27 = vsub.s32 %v3801_v28, %v1619_v7 }
 0x3de   : > { %v3755_v52 = vpop.f32.mrb[32].mxu1  ;;  %vm1660_vm5 = vcmp.ne.s32.totalorder %v3881_v27, 0  ;;  %vm1668_vm6 = vcmp.lt.s32.totalorder %v3881_v27, 0 }
 0x3df   : > { %v3757_v53 = vpop.f32.mrb[33].mxu1  ;;  %vm3934_vm11 = vmand %vm1668_vm6, %vm1660_vm5 }
 0x3e2   : > { %v3762_v55 = vpop.f32.mrb[34].mxu1 }
 0x3e3   : > { %v3767_v57 = vpop.f32.mrb[35].mxu1 }
 0x443   : > { %v1527_v6 = vpop.xlane.xlu0 %1526 }
 0x444   : > { %v1551_v11 = vadd.f32 %v3797_v26, %v1527_v6 }
 0x446   : > { %v2610_v18 = vmul.f32 -1.442695, %v1551_v11  ;;  %v1536_v19 = vpop.xlane.xlu1 %1535 }
 0x447   : > { %v1554_v23 = vadd.f32 %v3797_v26, %v1536_v19  ;;  %v1530_v24 = vpop.xlane.xlu0 %1529  ;;  %v1681_v19 = vadd.s32 9, %v3847_v1 }
 0x448   : > { %3222 = vpow2.f32 %v2610_v18  ;;  %v1552_v29 = vadd.f32 %v3797_v26, %v1530_v24  ;;  %v3870_v18 = vsub.s32 %v3795_v4, %v1597_v17 }
 0x449   : > { %v2613_v32 = vmul.f32 -1.442695, %v1554_v23  ;;  %v1651_v23 = vshrl.u32 %v3841_v56, 3  ;;  %v1689_v28 = vsel %vm3876_vm14, %v1681_v19, %v3847_v1 }
 0x44a   : > { %v2611_v35 = vmul.f32 -1.442695, %v1552_v29  ;;  %v1533_v36 = vpop.xlane.xlu1 %1532  ;;  %vm1658_vm1 = vcmp.ne.s32.totalorder %v3870_v18, 0  ;;  %vm1666_vm3 = vcmp.lt.s32.totalorder %v3870_v18, 0  ;;  %vm3925_vm8 = vcmp.ne.s32.totalorder %v1689_v28, 0 }
 0x44b   : > { %3224 = vpow2.f32 %v2613_v32  ;;  %v1553_v40 = vadd.f32 %v3797_v26, %v1533_v36  ;;  %v1539_v41 = vpop.xlane.xlu0 %1538  ;;  %v1688_v32 = vsel %vm3865_vm13, %v1680_v21, %v3830_v33  ;;  %v3901_v33 = vsub.s32 %v3808_v9, %v1630_v20  ;;  %vm3915_vm7 = vmand %vm1666_vm3, %vm1658_vm1 }
 0x44c   : > { %3226 = vpow2.f32 %v2611_v35  ;;  %v1555_v43 = vadd.f32 %v3797_v26, %v1539_v41  ;;  %v1641_v35 = vmul.u32 9, %v1640_v13  ;;  %v1652_v38 = vmul.u32 9, %v1651_v23 }
 0x44d   : > { %v2612_v58 = vmul.f32 -1.442695, %v1553_v40  ;;  %v1682_v40 = vadd.s32 9, %v3870_v18  ;;  %vm3906_vm2 = vcmp.ne.s32.totalorder %v1688_v32, 0  ;;  %v1691_v9 = vsel %vm3891_vm15, %v1683_v34, %v3843_v59 }
 0x44e   : > { %v2614_v62 = vmul.f32 -1.442695, %v1555_v43  ;;  %v1542_v2 = vpop.xlane.xlu1 %1541  ;;  %v1642_v56 = vsub.s32 %v3818_v22, %v1641_v35  ;;  %v1684_v59 = vadd.s32 9, %v3881_v27  ;;  %vm1661_vm9 = vcmp.ne.s32.totalorder %v3901_v33, 0 }
 0x44f   : > { %3228 = vpow2.f32 %v2612_v58  ;;  %v1556_v10 = vadd.f32 %v3797_v26, %v1542_v2  ;;  %v1545_v12 = vpop.xlane.xlu0 %1544  ;;  %v3923_v58 = vrot.slane %v3697_v0, %v2153_v61  ;;  %vm1669_vm10 = vcmp.lt.s32.totalorder %v3901_v33, 0 }
 0x450   : > { %3230 = vpow2.f32 %v2614_v62  ;;  %v1557_v3 = vadd.f32 %v3797_v26, %v1545_v12  ;;  %v1653_v0 = vsub.s32 %v3827_v30, %v1652_v38  ;;  %v3318_v61 = vmov 0.0   ;;  %vm3959_vm15 = vmand %vm1669_vm10, %vm1661_vm9 }
 0x451   : > { %v2615_v6 = vmul.f32 -1.442695, %v1556_v10  ;;  %v2602_v2 = vsel %vm3906_vm2, 1.0, %v3318_v61  ;;  %vm3942_vm12 = vcmp.ne.s32.totalorder %v1691_v9, 0  ;;  %v1690_v10 = vsel %vm3915_vm7, %v1682_v40, %v3870_v18 }
 0x452   : > { %v3223_v31 = vpop.eup %3222  ;;  %v2616_v8 = vmul.f32 -1.442695, %v1557_v3  ;;  %v1548_v11 = vpop.xlane.xlu1 %1547  ;;  %v1685_v3 = vadd.s32 9, %v3901_v33  ;;  %vm1662_vm13 = vcmp.ne.s32.totalorder %v1642_v56, 0  ;;  %vm1670_vm14 = vcmp.lt.s32.totalorder %v1642_v56, 0 }
 0x453   : > { %v1744_v14 = vadd.f32 1.0, %v3223_v31  ;;  %3232 = vpow2.f32 %v2615_v6  ;;  %v1558_v15 = vadd.f32 %v3797_v26, %v1548_v11  ;;  %v2603_v5 = vsel %vm3925_vm8, 1.0, %v3318_v61  ;;  %vm3973_vm6 = vmand %vm1670_vm14, %vm1662_vm13 }
 0x454   : > { %3234 = vpow2.f32 %v2616_v8  ;;  %v2227_v6 = vadd.f32 %v3749_v49, %v3923_v58  ;;  %v1692_v31 = vsel %vm3934_vm11, %v1684_v59, %v3881_v27  ;;  %vm1663_vm1 = vcmp.ne.s32.totalorder %v1653_v0, 0 }
 0x455   : > { %v3225_v24 = vpop.eup %3224  ;;  %3236 = vrcp.f32 %v1744_v14  ;;  %v2617_v26 = vmul.f32 -1.442695, %v1558_v15  ;;  %vm1671_vm3 = vcmp.lt.s32.totalorder %v1653_v0, 0  ;;  %v1686_v8 = vadd.s32 9, %v1642_v56 }
 0x456   : > { %v3227_v4 = vpop.eup %3226  ;;  %v1747_v29 = vadd.f32 1.0, %v3225_v24  ;;  %v2232_v49 = vadd.f32 %v3747_v48, %v3923_v58  ;;  %v2605_v13 = vsel %vm3942_vm12, 1.0, %v3318_v61  ;;  %vm1698_vm5 = vcmp.ne.s32.totalorder %v1690_v10, 0  ;;  %vm3982_vm7 = vmand %vm1671_vm3, %vm1663_vm1 }
 0x457   : > { %v1745_v36 = vadd.f32 1.0, %v3227_v4  ;;  %3238 = vpow2.f32 %v2617_v26  ;;  %v1693_v19 = vsel %vm3959_vm15, %v1685_v3, %v3901_v33  ;;  %v1687_v20 = vadd.s32 9, %v1653_v0 }
 0x458   : > { %3240 = vrcp.f32 %v1747_v29  ;;  %vm1700_vm2 = vcmp.ne.s32.totalorder %v1692_v31, 0  ;;  %v2604_v26 = vsel %vm1698_vm5, 1.0, %v3318_v61  ;;  %v1694_v25 = vsel %vm3973_vm6, %v1686_v8, %v1642_v56 }
 0x459   : > { %v3229_v39 = vpop.eup %3228  ;;  %3242 = vrcp.f32 %v1745_v36  ;;  %v2242_v4 = vadd.f32 %v3751_v50, %v3923_v58  ;;  %v2237_v29 = vadd.f32 %v3753_v51, %v3923_v58  ;;  %vm1701_vm8 = vcmp.ne.s32.totalorder %v1693_v19, 0 }
 0x45a   : > { %v3231_v41 = vpop.eup %3230  ;;  %v1746_v42 = vadd.f32 1.0, %v3229_v39  ;;  %v2606_v36 = vsel %vm1700_vm2, 1.0, %v3318_v61  ;;  %v1695_v37 = vsel %vm3982_vm7, %v1687_v20, %v1653_v0  ;;  %vm1702_vm9 = vcmp.ne.s32.totalorder %v1694_v25, 0 }
 0x45b   : > { %v1748_v60 = vadd.f32 1.0, %v3231_v41  ;;  %v2607_v38 = vsel %vm1701_vm8, 1.0, %v3318_v61  ;;  %v2252_v50 = vadd.f32 %v3755_v52, %v3923_v58  ;;  %v2247_v51 = vadd.f32 %v3757_v53, %v3923_v58 }
 0x45c   : > { %3244 = vrcp.f32 %v1746_v42  ;;  %vm1703_vm10 = vcmp.ne.s32.totalorder %v1695_v37, 0  ;;  %v2608_v9 = vsel %vm1702_vm9, 1.0, %v3318_v61  ;;  %v2257_v52 = vadd.f32 %v3767_v57, %v3923_v58  ;;  %v2150_v57 = vld [vmem:[%s4098_s0 + $0x8] sm:$0x3] }
 0x45d   : > { %v3233_v63 = vpop.eup %3232  ;;  %3246 = vrcp.f32 %v1748_v60  ;;  %v2609_v62 = vsel %vm1703_vm10, 1.0, %v3318_v61  ;;  %v2262_v22 = vadd.f32 %v3762_v55, %v3923_v58  ;;  %v2619_v55 = vld [vmem:[%s4122_s22] ss:$0 sm:$0xff] }
 0x45e   : > { %v3235_v12 = vpop.eup %3234  ;;  %v1749_v17 = vadd.f32 1.0, %v3233_v63  ;;  %v1964_v31 = vadd.f32 %v2619_v55, %v3741_v45 }
 0x45f   : > { %v3237_v30 = vpop.eup %3236  ;;  %v1750_v21 = vadd.f32 1.0, %v3235_v12 }
 0x460   : > { %3248 = vrcp.f32 %v1749_v17  ;;  %v1768_v18 = vmul.f32 %v3237_v30, %v2602_v2  ;;  %v2366_v17 = vpop.permute.xlu1 %2365 }
 0x461   : > { %v3239_v11 = vpop.eup %3238  ;;  %3250 = vrcp.f32 %v1750_v21  ;;  %v2361_v21 = vpop.permute.xlu0 %2360 }
 0x462   : > { %v3241_v15 = vpop.eup %3240  ;;  %v1751_v16 = vadd.f32 1.0, %v3239_v11  ;;  %v2265_v35 = vmul.f32 %v2227_v6, %v1768_v18  ;;  %v1969_v6 = vadd.f32 %v3739_v44, %v2619_v55 }
 0x463   : > { %v3243_v48 = vpop.eup %3242  ;;  %v1771_v27 = vmul.f32 %v3241_v15, %v2605_v13 }
 0x464   : > { %3252 = vrcp.f32 %v1751_v16  ;;  %v1769_v24 = vmul.f32 %v3243_v48, %v2603_v5 }
 0x465   : > { %v2268_v40 = vmul.f32 %v2242_v4, %v1771_v27 }
 0x466   : > { %v3245_v32 = vpop.eup %3244  ;;  %v2266_v34 = vmul.f32 %v2232_v49, %v1769_v24 }
 0x467   : > { %v3247_v28 = vpop.eup %3246  ;;  %v1770_v33 = vmul.f32 %v3245_v32, %v2604_v26 }
 0x468   : > { %v3139_v39 = vpack.c.bf16 %v2266_v34, %v2265_v35  ;;  %v1772_v42 = vmul.f32 %v3247_v28, %v2606_v36 }
 0x469   : > { %v2267_v41 = vmul.f32 %v2237_v29, %v1770_v33 }
 0x46a   : > { %v3249_v43 = vpop.eup %3248  ;;  %3140 = vmatprep.subr.bf16.mxu0 %v3139_v39  ;;  %v2269_v53 = vmul.f32 %v2247_v51, %v1772_v42 }
 0x46b   : > { %v3251_v54 = vpop.eup %3250  ;;  %v1773_v56 = vmul.f32 %v3249_v43, %v2607_v38  ;;  %3142 = vmatpush3.bf16.msra.mxu0 %v3139_v39  ;;  %v3143_v60 = vpack.c.bf16 %v2268_v40, %v2267_v41 }
 0x46c   : > { %v1774_v0 = vmul.f32 %v3251_v54, %v2608_v9 }
 0x46d   : > { %v2270_v59 = vmul.f32 %v2252_v50, %v1773_v56  ;;  %3144 = vmatprep.subr.bf16.mxu0 %v3143_v60 }
 0x46e   : > { %v3253_v63 = vpop.eup %3252  ;;  %v2271_v12 = vmul.f32 %v2257_v52, %v1774_v0 }
 0x46f   : > { %v1775_v2 = vmul.f32 %v3253_v63, %v2609_v62  ;;  %3146 = vmatpush3.bf16.msra.mxu0 %v3143_v60  ;;  %v3147_v1 = vpack.c.bf16 %v2270_v59, %v2269_v53 }
 0x471   : > { %v2272_v10 = vmul.f32 %v2262_v22, %v1775_v2  ;;  %3148 = vmatprep.subr.bf16.mxu0 %v3147_v1 }
 0x473   : > { %3150 = vmatpush3.bf16.msra.mxu0 %v3147_v1  ;;  %v3151_v61 = vpack.c.bf16 %v2272_v10, %v2271_v12 }
 0x475   : > { %3152 = vmatprep.subr.bf16.mxu0 %v3151_v61 }
 0x477   : > { %3154 = vmatpush3.bf16.msra.mxu0 %v3151_v61 }
 0x47a   : > { %3011 = vmatmul.mubr.msk.f32.vlgmr.msra.gmra.mrb[18].mxu0 %vm1198_vm4, %v2150_v57 }
 0x54d   : > { %v3012_v58 = vpop.f32.mrb[18].mxu0 }
 0x54e   : > { %v3155_v3 = vadd.f32 %v3012_v58, %v3743_v46  ;;  %v2345_v30 = vpop.f32.mrb[19].mxu0 }
 0x54f   : > { %v3156_v5 = vadd.f32 %v2345_v30, %v3745_v47 }
 0x550   : > { %v2369_v7 = vmul.f32 %v3155_v3, %v2366_v17 }
 0x551   : > { %v2368_v8 = vmul.f32 %v3156_v5, %v2361_v21 }
 0x552   : > { %v2371_v11 = vadd.f32 %v2369_v7, %v1969_v6 }
 0x553   : > { %v2370_v49 = vadd.f32 %v2368_v8, %v1964_v31 }
 0x554   : > { %vm2373_vm4 = vcmp.gt.f32.partialorder %v2371_v11, 0.0  ;;  %v2375_v13 = vmul.f32 0.01, %v2371_v11 }
 0x555   : > { %v2374_v14 = vmul.f32 0.01, %v2370_v49  ;;  %vm2372_vm11 = vcmp.gt.f32.partialorder %v2370_v49, 0.0 }
 0x556   : > { %v2377_v15 = vsel %vm2373_vm4, %v2371_v11, %v2375_v13 }
 0x557   : > { %2379 = vst [vmem:[%s4070_s17 + $0x8] sm:$0x3] %v2377_v15  ;;  %v2376_v46 = vsel %vm2372_vm11, %v2370_v49, %v2374_v14 }
 0x558   : > { %2378 = vst [vmem:[%s4070_s17] sm:$0xff] %v2376_v46  ;;  %v2381_v44 = vrot.slane %v2376_v46, 2 }
 0x55a   : > { %v2383_v45 = vsel %vm733_vm0, %v2381_v44, 0.0 }
 0x55b   : > { %v2384_v47 = vrot.slane %v2383_v45, 4 }
 0x55d   : > { %v2385_v16 = vadd.f32 %v2384_v47, %v2383_v45 }
 0x55f   : > { %v2386_v18 = vrot.slane %v2385_v16, 2 }
 0x561   : > { %v2387_v19 = vadd.f32 %v2386_v18, %v2385_v16 }
 0x563   : > { %v2388_v20 = vrot.slane %v2387_v19, 1 }
 0x565   : > { %v2389_v48 = vadd.f32 %v2388_v20, %v2387_v19 }
 0x567   : > { %v2636_v23 = vmul.f32 -0.16666667, %v2389_v48 }
 0x569   : > { %v2393_v24 = vmul.f32 1.442695, %v2636_v23 }
 0x56b   : > { %3254 = vpow2.f32 %v2393_v24 }
 0x575   : > { %v3255_v26 = vpop.eup %3254 }
 0x576   : > { %v2395_v25 = vadd.f32 1.0, %v3255_v26 }
 0x578   : > { %3256 = vrcp.f32 %v2395_v25 }
 0x582   : > { %v3257_v27 = vpop.eup %3256 }
 0x583   : > { %v2398_v4 = vadd.f32 %v3257_v27, %v2376_v46 }
 0x585   : > { %2399 = vst [vmem:[#allocation5] sm:$0x1] %v2398_v4 }
 0x586   : > { %3286 = shalt.err (!%p3283_p9)
}
 0x587   : > { %s4123_s3 = sld [smem:[#allocation17_spill]] }
 0x58d   : > { %s3287_s7 = scalar_lea.hbm %s4123_s3, 16 }
 0x58e   : > { %p3288_p10 = scmp.ne.s32.totalorder %s4123_s3, %s3287_s7  ;;  %p3293_p13 = scmp.lt.u32.totalorder %s3287_s7, %s4123_s3 }
 0x590   : > { %p3289_p11 = pnand %p3288_p10, %p3189_p2 }
 0x592   : > { %p3290_p12 = pneg %p3289_p11 }
 0x594   : > { %p3295_p0 = pnand %p3293_p13, %p3290_p12 }
 0x596   : > { %3298 = shalt.err (!%p3295_p0)
}
 0x597   : > { %3180 = dma.vmem_to_hbm [thread:$0]  (%p3189_p2), %s2411_s18, 16, %s4123_s3, [#allocation3]  }
 0x598   : > { %3308 = dma.done.wait (%p3189_p2), [#allocation3], 16  }
 0x599   : > { %3310 = vsyncadd (%p3189_p2), [#allocation3], 4294967280 }
 0x59a PF: > { %s4124_s20 = sld [smem:[#allocation8_spill]] }
 0x5a0   : > { %s31_s27 = sadd.s32 1, %s4124_s20  }
 0x5a1   : > { %p28_p1 = scmp.ge.s32.totalorder %s31_s27, 4  }
 0x5a3   :  { %30 = sbr.rel (!%p28_p1) target bundleno = 12 (0xc), region = 156 }
 0x5aa   :  { %2426 = vsyncpa [#allocation3], 1 }
 0x5ab   :  { %2428 = vsyncpa [#allocation3 + $0x1], 1 }
 0x5ac   :  { %2429 = vsyncpa [#allocation4], 1 }
 0x5ad   :  { %2431 = vsyncpa [#allocation4 + $0x1], 1 }

</bundles_post_ra>
